<compile_context>
chip_gen: v6e
topology: v6e:2x2x1
jax: 0.10.0
libtpu: 0.0.40
codegen_flags: <defaults>
</compile_context>

<pallas_src>
import functools

import jax
import jax.numpy as jnp
from jax import lax
from jax.experimental import pallas as pl
from jax.experimental.pallas import tpu as pltpu

# MXU operand dtype.  f32 -> exact agreement with the f32 reference at this size;
# set to jnp.bfloat16 on v6e/v7x (bf16-native MXU, ~3x fewer vmatmul passes).
MATMUL_DTYPE = jnp.float32


def _sigmoid(v):
    # Overflow-free logistic.  exp and the approximate reciprocal both occupy the
    # otherwise-idle EUP slot, keeping VALU slots free for bias/ReLU/combine work.
    e = jnp.exp(-jnp.abs(v))
    r = pl.reciprocal(1.0 + e, approx=True)
    return jnp.where(v >= 0, r, e * r)


def _mm(a, b):
    if a.dtype != MATMUL_DTYPE:
        a = a.astype(MATMUL_DTYPE)
    if b.dtype != MATMUL_DTYPE:
        b = b.astype(MATMUL_DTYPE)
    return jnp.dot(a, b, preferred_element_type=jnp.float32)


# ---------------------------------------------------------------------------
# The fused PRM kernel (one grid step = B_TILE batch elements).
# ---------------------------------------------------------------------------
def _prm_kernel(x_ref, w_top_ref, b_top_ref,
                w_m1_ref, b_m1_ref, w_m2_ref, b_m2_ref,
                w_b1_ref, b_b1_ref, w_dw_ref, b_dw_ref,
                w_pw_ref, b_pw_ref,
                out_ref, xpad_ref, b1pad_ref, *, B, H, W, C):
    WC = W * C
    BH = B * H
    f32 = jnp.float32
    x = x_ref[...]                                             # (B, H, W*C) lane-dense

    # ---- top path: 3x3 conv + BN + ReLU ----
    # kx taps live inside the banded weight; only ky needs row-shifted slices.
    xpad_ref[:, 0:1, :] = jnp.zeros((B, 1, WC), f32)           # halo rows only
    xpad_ref[:, H + 1:H + 2, :] = jnp.zeros((B, 1, WC), f32)
    xpad_ref[:, 1:1 + H, :] = x
    patches = jnp.concatenate(
        [xpad_ref[:, ky:ky + H, :] for ky in range(3)], axis=-1)      # (B, H, 3*WC)
    top = jnp.maximum(_mm(patches.reshape(BH, 3 * WC), w_top_ref[...])
                      + b_top_ref[...], 0.0)                           # (B*H, WC)

    # ---- mid path: global avg pool (folded into w_m1) -> 1x1 -> 1x1 -> sigmoid ----
    colsum = jnp.sum(top.reshape(B, H, WC), axis=1)                    # (B, WC)
    h1 = jnp.maximum(_mm(colsum, w_m1_ref[...]) + b_m1_ref[...], 0.0)  # pool+conv fused
    h2 = jnp.maximum(_mm(h1, w_m2_ref[...]) + b_m2_ref[...], 0.0)
    mid = _sigmoid(h2)                                                 # (B, WC) per-channel

    # ---- bottom path: 1x1 conv + BN + ReLU ----
    b1 = jnp.maximum(_mm(top, w_b1_ref[...]) + b_b1_ref[...], 0.0)     # (B*H, WC)

    # 9x9 depthwise conv (+BN+ReLU): ONE matmul against stacked banded weights.
    b1pad_ref[:, 0:4, :] = jnp.zeros((B, 4, WC), f32)                  # halo rows only
    b1pad_ref[:, H + 4:H + 8, :] = jnp.zeros((B, 4, WC), f32)
    b1pad_ref[:, 4:4 + H, :] = b1.reshape(B, H, WC)
    rows = jnp.concatenate(
        [b1pad_ref[:, ky:ky + H, :] for ky in range(9)], axis=-1)      # (B, H, 9*WC)
    d = jnp.maximum(_mm(rows.reshape(BH, 9 * WC), w_dw_ref[...])
                    + b_dw_ref[...], 0.0)                              # (B*H, WC)

    # pointwise C->1 (+BN+ReLU) + sigmoid; value already replicated over the C lanes
    pw = _mm(d, w_pw_ref[...]) + b_pw_ref[...]
    bottom = _sigmoid(jnp.maximum(pw, 0.0))                            # (B*H, WC)

    # ---- combine: out = top * (1 + mid * bottom) ----
    out_ref[...] = (top.reshape(B, H, WC)
                    * (1.0 + mid[:, None, :] * bottom.reshape(B, H, WC)))


# ---------------------------------------------------------------------------
# Parameter packing: fold BN into weights, build banded / block-diagonal matrices
# so the kernel stays lane-dense.  Runs once per call in plain JAX (tiny).
# ---------------------------------------------------------------------------
def _pack_params(p, H, W, C):
    WC = W * C
    f32 = jnp.float32
    eye_w = jnp.eye(W, dtype=f32)

    def bd(mat_cc):
        # (C, C) per-pixel channel mixing -> (W*C, W*C) block-diagonal on lane-dense rows
        return jnp.kron(eye_w, mat_cc.astype(f32))

    def lane(vec):
        # per-channel vector -> (1, W*C) lane tile (w-major, c-minor)
        return jnp.tile(jnp.reshape(vec, (1, C)).astype(f32), (1, W))

    lane_i = jnp.arange(WC)
    ci = (lane_i % C)[:, None]          # input-lane channel
    co = (lane_i % C)[None, :]          # output-lane channel
    wi = (lane_i // C)[:, None]         # input-lane column
    wo = (lane_i // C)[None, :]         # output-lane column

    q = {}

    # top 3x3: three stacked per-ky banded (WC, WC) blocks (kx band + SAME
    # truncation baked in), BN scale folded into the output columns.
    w_top = p["w_top"].astype(f32) * jnp.reshape(p["s_top"], (1, 1, 1, C))   # HWIO
    kx = wi - wo + 1
    in_band = (kx >= 0) & (kx < 3)
    kx_c = jnp.clip(kx, 0, 2)
    q["w_top"] = jnp.concatenate(
        [jnp.where(in_band, w_top[ky, kx_c, ci, co], 0.0) for ky in range(3)],
        axis=0)                                                   # (3*WC, WC)
    q["b_top"] = lane(p["b_top"])

    # mid path: global-average-pool matrix folded into the first 1x1 conv weight
    q["w_m1"] = jnp.kron(
        jnp.ones((W, W), f32),
        (p["w_m1"] * jnp.reshape(p["s_m1"], (1, C))).astype(f32)) / float(H * W)
    q["b_m1"] = lane(p["b_m1"])
    q["w_m2"] = bd(p["w_m2"] * jnp.reshape(p["s_m2"], (1, C)))
    q["b_m2"] = lane(p["b_m2"])

    # bottom 1x1 conv
    q["w_b1"] = bd(p["w_b1"] * jnp.reshape(p["s_b1"], (1, C)))
    q["b_b1"] = lane(p["b_b1"])

    # 9x9 depthwise: nine stacked per-ky banded (WC, WC) blocks -> one matmul
    wdw = p["w_dw"].astype(f32) * jnp.reshape(p["s_dw"], (1, 1, C))      # (9, 9, C)
    kxd = wi - wo + 4
    in_band_d = (ci == co) & (kxd >= 0) & (kxd < 9)
    kxd_c = jnp.clip(kxd, 0, 8)
    q["w_dw"] = jnp.concatenate(
        [jnp.where(in_band_d, wdw[ky, kxd_c, co], 0.0) for ky in range(9)],
        axis=0)                                                   # (9*WC, WC)
    q["b_dw"] = lane(p["b_dw"])

    # pointwise C->1 (+BN scale), replicated over the C lanes of each pixel
    pw = jnp.reshape(p["w_pw"], (C, 1)).astype(f32) * jnp.reshape(p["s_pw"], ())
    q["w_pw"] = bd(jnp.broadcast_to(pw, (C, C)))
    q["b_pw"] = jnp.broadcast_to(jnp.reshape(p["b_pw"], (1, 1)).astype(f32), (1, WC))

    # store MXU weights in the operand dtype (bf16 halves weight DMA/VMEM on v6e/v7x)
    for k in ("w_top", "w_m1", "w_m2", "w_b1", "w_dw", "w_pw"):
        q[k] = q[k].astype(MATMUL_DTYPE)
    return q


def _pick_batch_tile(N, H):
    # Pack batch into the matmul M dimension; target M = B_TILE*H >= 128.
    # NOTE(v7x): cap at N // 2 there so the "parallel" grid keeps >= 2 steps
    # and both TensorCores receive work.
    bt = min(N, max(1, -(-128 // H)))
    while N % bt:
        bt -= 1
    return bt


def _prm_pallas(x_lane, q, B, H, W, C):
    N = x_lane.shape[0]
    WC = W * C
    kernel = functools.partial(_prm_kernel, B=B, H=H, W=W, C=C)
    cst2 = lambda n: (0, 0)
    return pl.pallas_call(
        kernel,
        out_shape=jax.ShapeDtypeStruct((N, H, WC), jnp.float32),
        grid=(N // B,),
        in_specs=[
            pl.BlockSpec((B, H, WC), lambda n: (n, 0, 0)),    # x (lane-dense)
            pl.BlockSpec((3 * WC, WC), cst2),                 # w_top (banded, stacked ky)
            pl.BlockSpec((1, WC), cst2),                      # b_top
            pl.BlockSpec((WC, WC), cst2),                     # w_m1 (pool folded in)
            pl.BlockSpec((1, WC), cst2),                      # b_m1
            pl.BlockSpec((WC, WC), cst2),                     # w_m2
            pl.BlockSpec((1, WC), cst2),                      # b_m2
            pl.BlockSpec((WC, WC), cst2),                     # w_b1
            pl.BlockSpec((1, WC), cst2),                      # b_b1
            pl.BlockSpec((9 * WC, WC), cst2),                 # w_dw (banded, stacked ky)
            pl.BlockSpec((1, WC), cst2),                      # b_dw
            pl.BlockSpec((WC, WC), cst2),                     # w_pw
            pl.BlockSpec((1, WC), cst2),                      # b_pw
        ],
        out_specs=pl.BlockSpec((B, H, WC), lambda n: (n, 0, 0)),
        scratch_shapes=[
            pltpu.VMEM((B, H + 2, WC), jnp.float32),          # row-padded input (3x3)
            pltpu.VMEM((B, H + 8, WC), jnp.float32),          # row-padded b1 (dw 9x9)
        ],
        compiler_params=pltpu.CompilerParams(
            dimension_semantics=("parallel",),
        ),
    )(x_lane, q["w_top"], q["b_top"],
      q["w_m1"], q["b_m1"], q["w_m2"], q["b_m2"],
      q["w_b1"], q["b_b1"], q["w_dw"], q["b_dw"],
      q["w_pw"], q["b_pw"])


@jax.jit
def prm_forward(x_nchw, p):
    N, C, H, W = x_nchw.shape
    WC = W * C
    # TODO(synk): at production sizes accept/emit the lane-dense (N, H, W*C) layout
    # directly from neighboring ops instead of paying these NCHW<->NHWC transposes.
    x_lane = jnp.transpose(x_nchw, (0, 2, 3, 1)).astype(jnp.float32).reshape(N, H, WC)
    q = _pack_params(p, H, W, C)
    b_tile = _pick_batch_tile(N, H)
    out_lane = _prm_pallas(x_lane, q, b_tile, H, W, C)
    return jnp.transpose(out_lane.reshape(N, H, W, C), (0, 3, 1, 2))


# ---------------------------------------------------------------------------
# Pure-JAX reference (module semantics) and parameter init.
# ---------------------------------------------------------------------------
def prm_reference(x_nchw, p):
    dn = ("NHWC", "HWIO", "NHWC")
    x = jnp.transpose(x_nchw, (0, 2, 3, 1)).astype(jnp.float32)
    N, H, W, C = x.shape
    top = lax.conv_general_dilated(x, p["w_top"], (1, 1), "SAME",
                                   dimension_numbers=dn)
    top = jnp.maximum(top * p["s_top"] + p["b_top"], 0.0)
    pooled = jnp.mean(top, axis=(1, 2))
    h = jnp.maximum((pooled @ p["w_m1"]) * p["s_m1"] + p["b_m1"], 0.0)
    h = jnp.maximum((h @ p["w_m2"]) * p["s_m2"] + p["b_m2"], 0.0)
    mid = jax.nn.sigmoid(h)                                           # (N, C)
    b1 = jnp.einsum("nhwc,cd->nhwd", top, p["w_b1"])
    b1 = jnp.maximum(b1 * p["s_b1"] + p["b_b1"], 0.0)
    d = lax.conv_general_dilated(b1, p["w_dw"][:, :, None, :], (1, 1),
                                 [(4, 4), (4, 4)], dimension_numbers=dn,
                                 feature_group_count=C)
    d = jnp.maximum(d * p["s_dw"] + p["b_dw"], 0.0)
    pw = jnp.einsum("nhwc,co->nhwo", d, p["w_pw"])
    pw = jnp.maximum(pw * p["s_pw"] + p["b_pw"], 0.0)
    bottom = jax.nn.sigmoid(pw)                                       # (N, H, W, 1)
    out = top * (1.0 + mid[:, None, None, :] * bottom)
    return jnp.transpose(out, (0, 3, 1, 2))


def init_params(key, C):
    keys = jax.random.split(key, 12)

    def bn(k, ch):
        gamma = 1.0 + 0.1 * jax.random.normal(k, (ch,), jnp.float32)
        beta = 0.1 * jax.random.normal(jax.random.fold_in(k, 7), (ch,), jnp.float32)
        scale = gamma / jnp.sqrt(1.0 + 1e-5)   # running_var = 1, running_mean = 0
        return scale, beta

    p = {}
    p["w_top"] = 0.2 * jax.random.normal(keys[0], (3, 3, C, C), jnp.float32)   # HWIO
    p["s_top"], p["b_top"] = bn(keys[1], C)
    p["w_m1"] = 0.3 * jax.random.normal(keys[2], (C, C), jnp.float32)          # (Cin, Cout)
    p["s_m1"], p["b_m1"] = bn(keys[3], C)
    p["w_m2"] = 0.3 * jax.random.normal(keys[4], (C, C), jnp.float32)
    p["s_m2"], p["b_m2"] = bn(keys[5], C)
    p["w_b1"] = 0.3 * jax.random.normal(keys[6], (C, C), jnp.float32)
    p["s_b1"], p["b_b1"] = bn(keys[7], C)
    p["w_dw"] = 0.1 * jax.random.normal(keys[8], (9, 9, C), jnp.float32)       # per-channel 9x9
    p["s_dw"], p["b_dw"] = bn(keys[9], C)
    p["w_pw"] = 0.3 * jax.random.normal(keys[10], (C, 1), jnp.float32)
    p["s_pw"], p["b_pw"] = bn(keys[11], 1)
    return p


if __name__ == "__main__":
    N, C, H, W = 2, 8, 16, 16          # W*C = 128 -> fully lane-dense tiles
    key = jax.random.PRNGKey(0)
    kx_, kp = jax.random.split(key)
    x = jax.random.normal(kx_, (N, C, H, W), jnp.float32)   # NCHW, like PyTorch input
    params = init_params(kp, C)

    out = jax.block_until_ready(prm_forward(x, params))
    assert out.shape == (N, C, H, W)

    ref = jax.block_until_ready(prm_reference(x, params))
    tol = 2e-2 if MATMUL_DTYPE == jnp.float32 else 6e-2
    if not jnp.allclose(out, ref, atol=tol, rtol=tol):
        raise AssertionError(
            f"mismatch, max abs err {float(jnp.max(jnp.abs(out - ref))):.3e}")
    print("KERNEL_OK")
</pallas_src>

<mosaic_0001>
module attributes {stable_mosaic.version = 11 : i64} {
  func.func @_prm_kernel(%arg0: i32, %arg1: memref<2x16x128xf32, #tpu.memory_space<vmem>>, %arg2: memref<384x128xf32, #tpu.memory_space<vmem>>, %arg3: memref<1x128xf32, #tpu.memory_space<vmem>>, %arg4: memref<128x128xf32, #tpu.memory_space<vmem>>, %arg5: memref<1x128xf32, #tpu.memory_space<vmem>>, %arg6: memref<128x128xf32, #tpu.memory_space<vmem>>, %arg7: memref<1x128xf32, #tpu.memory_space<vmem>>, %arg8: memref<128x128xf32, #tpu.memory_space<vmem>>, %arg9: memref<1x128xf32, #tpu.memory_space<vmem>>, %arg10: memref<1152x128xf32, #tpu.memory_space<vmem>>, %arg11: memref<1x128xf32, #tpu.memory_space<vmem>>, %arg12: memref<128x128xf32, #tpu.memory_space<vmem>>, %arg13: memref<1x128xf32, #tpu.memory_space<vmem>>, %arg14: memref<2x16x128xf32, #tpu.memory_space<vmem>>, %arg15: memref<2x18x128xf32, #tpu.memory_space<vmem>>, %arg16: memref<2x24x128xf32, #tpu.memory_space<vmem>>) attributes {dimension_semantics = [#tpu.dimension_semantics<parallel>], iteration_bounds = array<i64: 1>, scalar_prefetch = 0 : i64, scratch_operands = 2 : i64, tpu.core_type = #tpu.core_type<tc>, window_params = [{transform_indices = @transform_0, window_bounds = array<i64: 2, 16, 128>}, {pipeline_mode = #tpu.pipeline_mode<synchronous>, transform_indices = @transform_1, window_bounds = array<i64: 384, 128>}, {pipeline_mode = #tpu.pipeline_mode<synchronous>, transform_indices = @transform_2, window_bounds = array<i64: 1, 128>}, {pipeline_mode = #tpu.pipeline_mode<synchronous>, transform_indices = @transform_3, window_bounds = array<i64: 128, 128>}, {pipeline_mode = #tpu.pipeline_mode<synchronous>, transform_indices = @transform_4, window_bounds = array<i64: 1, 128>}, {pipeline_mode = #tpu.pipeline_mode<synchronous>, transform_indices = @transform_5, window_bounds = array<i64: 128, 128>}, {pipeline_mode = #tpu.pipeline_mode<synchronous>, transform_indices = @transform_6, window_bounds = array<i64: 1, 128>}, {pipeline_mode = #tpu.pipeline_mode<synchronous>, transform_indices = @transform_7, window_bounds = array<i64: 128, 128>}, {pipeline_mode = #tpu.pipeline_mode<synchronous>, transform_indices = @transform_8, window_bounds = array<i64: 1, 128>}, {pipeline_mode = #tpu.pipeline_mode<synchronous>, transform_indices = @transform_9, window_bounds = array<i64: 1152, 128>}, {pipeline_mode = #tpu.pipeline_mode<synchronous>, transform_indices = @transform_10, window_bounds = array<i64: 1, 128>}, {pipeline_mode = #tpu.pipeline_mode<synchronous>, transform_indices = @transform_11, window_bounds = array<i64: 128, 128>}, {pipeline_mode = #tpu.pipeline_mode<synchronous>, transform_indices = @transform_12, window_bounds = array<i64: 1, 128>}, {transform_indices = @transform_13, window_bounds = array<i64: 2, 16, 128>}]} {
    %c0 = arith.constant 0 : index
    %c0_0 = arith.constant 0 : index
    %c0_1 = arith.constant 0 : index
    %0 = vector.load %arg1[%c0, %c0_0, %c0_1] : memref<2x16x128xf32, #tpu.memory_space<vmem>>, vector<2x16x128xf32>
    %cst = arith.constant 0.000000e+00 : f32
    %1 = vector.broadcast %cst : f32 to vector<2x1x128xf32>
    %c0_2 = arith.constant 0 : index
    %c0_3 = arith.constant 0 : index
    %c0_4 = arith.constant 0 : index
    %2 = vector.load %arg15[%c0_2, %c0_3, %c0_4] : memref<2x18x128xf32, #tpu.memory_space<vmem>>, vector<2x1x128xf32>
    tpu.vector_store %arg15[%c0_2, %c0_3, %c0_4], %1 {strides = array<i32>} : memref<2x18x128xf32, #tpu.memory_space<vmem>>, vector<2x1x128xf32>,
    %cst_5 = arith.constant 0.000000e+00 : f32
    %3 = vector.broadcast %cst_5 : f32 to vector<2x1x128xf32>
    %c0_6 = arith.constant 0 : index
    %c17 = arith.constant 17 : index
    %c0_7 = arith.constant 0 : index
    %4 = vector.load %arg15[%c0_6, %c17, %c0_7] : memref<2x18x128xf32, #tpu.memory_space<vmem>>, vector<2x1x128xf32>
    tpu.vector_store %arg15[%c0_6, %c17, %c0_7], %3 {strides = array<i32>} : memref<2x18x128xf32, #tpu.memory_space<vmem>>, vector<2x1x128xf32>,
    %c0_8 = arith.constant 0 : index
    %c1 = arith.constant 1 : index
    %c0_9 = arith.constant 0 : index
    %5 = vector.load %arg15[%c0_8, %c1, %c0_9] : memref<2x18x128xf32, #tpu.memory_space<vmem>>, vector<2x16x128xf32>
    tpu.vector_store %arg15[%c0_8, %c1, %c0_9], %0 {strides = array<i32>} : memref<2x18x128xf32, #tpu.memory_space<vmem>>, vector<2x16x128xf32>,
    %c0_10 = arith.constant 0 : index
    %c0_11 = arith.constant 0 : index
    %c0_12 = arith.constant 0 : index
    %6 = vector.load %arg15[%c0_10, %c0_11, %c0_12] : memref<2x18x128xf32, #tpu.memory_space<vmem>>, vector<2x16x128xf32>
    %c0_13 = arith.constant 0 : index
    %c1_14 = arith.constant 1 : index
    %c0_15 = arith.constant 0 : index
    %7 = vector.load %arg15[%c0_13, %c1_14, %c0_15] : memref<2x18x128xf32, #tpu.memory_space<vmem>>, vector<2x16x128xf32>
    %c0_16 = arith.constant 0 : index
    %c2 = arith.constant 2 : index
    %c0_17 = arith.constant 0 : index
    %8 = vector.load %arg15[%c0_16, %c2, %c0_17] : memref<2x18x128xf32, #tpu.memory_space<vmem>>, vector<2x16x128xf32>
    %9 = tpu.concatenate %6, %7, %8 in 2 : vector<2x16x128xf32>, vector<2x16x128xf32>, vector<2x16x128xf32> -> vector<2x16x384xf32>
    %10 = vector.shape_cast %9 : vector<2x16x384xf32> to vector<32x384xf32>
    %c0_18 = arith.constant 0 : index
    %c0_19 = arith.constant 0 : index
    %11 = vector.load %arg2[%c0_18, %c0_19] : memref<384x128xf32, #tpu.memory_space<vmem>>, vector<384x128xf32>
    %cst_20 = arith.constant dense<0.000000e+00> : vector<32x128xf32>
    %12 = tpu.matmul %10, %11, %cst_20 {dimension_numbers = #tpu.dot_dimension_numbers<[1], [0], [0], [1], [0, 0, 1, 1], [], []>} : vector<32x384xf32>, vector<384x128xf32>, vector<32x128xf32> -> vector<32x128xf32>
    %c0_21 = arith.constant 0 : index
    %c0_22 = arith.constant 0 : index
    %13 = vector.load %arg3[%c0_21, %c0_22] : memref<1x128xf32, #tpu.memory_space<vmem>>, vector<1x128xf32>
    %14 = vector.broadcast %13 : vector<1x128xf32> to vector<32x128xf32>
    %15 = arith.addf %12, %14 : vector<32x128xf32>
    %cst_23 = arith.constant 0.000000e+00 : f32
    %16 = vector.broadcast %cst_23 : f32 to vector<32x128xf32>
    %17 = arith.maximumf %15, %16 : vector<32x128xf32>
    %18 = vector.shape_cast %17 : vector<32x128xf32> to vector<2x16x128xf32>
    %cst_24 = arith.constant dense<0.000000e+00> : vector<2x128xf32>
    %19 = vector.multi_reduction <add>, %18, %cst_24 [1] : vector<2x16x128xf32> to vector<2x128xf32>
    %c0_25 = arith.constant 0 : index
    %c0_26 = arith.constant 0 : index
    %20 = vector.load %arg4[%c0_25, %c0_26] : memref<128x128xf32, #tpu.memory_space<vmem>>, vector<128x128xf32>
    %cst_27 = arith.constant dense<0.000000e+00> : vector<2x128xf32>
    %21 = tpu.matmul %19, %20, %cst_27 {dimension_numbers = #tpu.dot_dimension_numbers<[1], [0], [0], [1], [0, 0, 1, 1], [], []>} : vector<2x128xf32>, vector<128x128xf32>, vector<2x128xf32> -> vector<2x128xf32>
    %c0_28 = arith.constant 0 : index
    %c0_29 = arith.constant 0 : index
    %22 = vector.load %arg5[%c0_28, %c0_29] : memref<1x128xf32, #tpu.memory_space<vmem>>, vector<1x128xf32>
    %23 = vector.broadcast %22 : vector<1x128xf32> to vector<2x128xf32>
    %24 = arith.addf %21, %23 : vector<2x128xf32>
    %cst_30 = arith.constant 0.000000e+00 : f32
    %25 = vector.broadcast %cst_30 : f32 to vector<2x128xf32>
    %26 = arith.maximumf %24, %25 : vector<2x128xf32>
    %c0_31 = arith.constant 0 : index
    %c0_32 = arith.constant 0 : index
    %27 = vector.load %arg6[%c0_31, %c0_32] : memref<128x128xf32, #tpu.memory_space<vmem>>, vector<128x128xf32>
    %cst_33 = arith.constant dense<0.000000e+00> : vector<2x128xf32>
    %28 = tpu.matmul %26, %27, %cst_33 {dimension_numbers = #tpu.dot_dimension_numbers<[1], [0], [0], [1], [0, 0, 1, 1], [], []>} : vector<2x128xf32>, vector<128x128xf32>, vector<2x128xf32> -> vector<2x128xf32>
    %c0_34 = arith.constant 0 : index
    %c0_35 = arith.constant 0 : index
    %29 = vector.load %arg7[%c0_34, %c0_35] : memref<1x128xf32, #tpu.memory_space<vmem>>, vector<1x128xf32>
    %30 = vector.broadcast %29 : vector<1x128xf32> to vector<2x128xf32>
    %31 = arith.addf %28, %30 : vector<2x128xf32>
    %cst_36 = arith.constant 0.000000e+00 : f32
    %32 = vector.broadcast %cst_36 : f32 to vector<2x128xf32>
    %33 = arith.maximumf %31, %32 : vector<2x128xf32>
    %34 = math.absf %33 : vector<2x128xf32>
    %cst_37 = arith.constant 0.000000e+00 : f32
    %35 = vector.broadcast %cst_37 : f32 to vector<2x128xf32>
    %36 = arith.subf %35, %34 : vector<2x128xf32>
    %37 = math.exp %36 : vector<2x128xf32>
    %cst_38 = arith.constant 1.000000e+00 : f32
    %38 = vector.broadcast %cst_38 : f32 to vector<2x128xf32>
    %39 = arith.addf %38, %37 : vector<2x128xf32>
    %40 = tpu.reciprocal %39 {approx = true} : vector<2x128xf32> -> vector<2x128xf32>
    %cst_39 = arith.constant 0.000000e+00 : f32
    %41 = vector.broadcast %cst_39 : f32 to vector<2x128xf32>
    %42 = arith.cmpf oge, %33, %41 : vector<2x128xf32>
    %43 = arith.mulf %37, %40 : vector<2x128xf32>
    %44 = arith.select %42, %40, %43 : vector<2x128xi1>, vector<2x128xf32>
    %c0_40 = arith.constant 0 : index
    %c0_41 = arith.constant 0 : index
    %45 = vector.load %arg8[%c0_40, %c0_41] : memref<128x128xf32, #tpu.memory_space<vmem>>, vector<128x128xf32>
    %cst_42 = arith.constant dense<0.000000e+00> : vector<32x128xf32>
    %46 = tpu.matmul %17, %45, %cst_42 {dimension_numbers = #tpu.dot_dimension_numbers<[1], [0], [0], [1], [0, 0, 1, 1], [], []>} : vector<32x128xf32>, vector<128x128xf32>, vector<32x128xf32> -> vector<32x128xf32>
    %c0_43 = arith.constant 0 : index
    %c0_44 = arith.constant 0 : index
    %47 = vector.load %arg9[%c0_43, %c0_44] : memref<1x128xf32, #tpu.memory_space<vmem>>, vector<1x128xf32>
    %48 = vector.broadcast %47 : vector<1x128xf32> to vector<32x128xf32>
    %49 = arith.addf %46, %48 : vector<32x128xf32>
    %cst_45 = arith.constant 0.000000e+00 : f32
    %50 = vector.broadcast %cst_45 : f32 to vector<32x128xf32>
    %51 = arith.maximumf %49, %50 : vector<32x128xf32>
    %cst_46 = arith.constant 0.000000e+00 : f32
    %52 = vector.broadcast %cst_46 : f32 to vector<2x4x128xf32>
    %c0_47 = arith.constant 0 : index
    %c0_48 = arith.constant 0 : index
    %c0_49 = arith.constant 0 : index
    %53 = vector.load %arg16[%c0_47, %c0_48, %c0_49] : memref<2x24x128xf32, #tpu.memory_space<vmem>>, vector<2x4x128xf32>
    tpu.vector_store %arg16[%c0_47, %c0_48, %c0_49], %52 {strides = array<i32>} : memref<2x24x128xf32, #tpu.memory_space<vmem>>, vector<2x4x128xf32>,
    %cst_50 = arith.constant 0.000000e+00 : f32
    %54 = vector.broadcast %cst_50 : f32 to vector<2x4x128xf32>
    %c0_51 = arith.constant 0 : index
    %c20 = arith.constant 20 : index
    %c0_52 = arith.constant 0 : index
    %55 = vector.load %arg16[%c0_51, %c20, %c0_52] : memref<2x24x128xf32, #tpu.memory_space<vmem>>, vector<2x4x128xf32>
    tpu.vector_store %arg16[%c0_51, %c20, %c0_52], %54 {strides = array<i32>} : memref<2x24x128xf32, #tpu.memory_space<vmem>>, vector<2x4x128xf32>,
    %56 = vector.shape_cast %51 : vector<32x128xf32> to vector<2x16x128xf32>
    %c0_53 = arith.constant 0 : index
    %c4 = arith.constant 4 : index
    %c0_54 = arith.constant 0 : index
    %57 = vector.load %arg16[%c0_53, %c4, %c0_54] : memref<2x24x128xf32, #tpu.memory_space<vmem>>, vector<2x16x128xf32>
    tpu.vector_store %arg16[%c0_53, %c4, %c0_54], %56 {strides = array<i32>} : memref<2x24x128xf32, #tpu.memory_space<vmem>>, vector<2x16x128xf32>,
    %c0_55 = arith.constant 0 : index
    %c0_56 = arith.constant 0 : index
    %c0_57 = arith.constant 0 : index
    %58 = vector.load %arg16[%c0_55, %c0_56, %c0_57] : memref<2x24x128xf32, #tpu.memory_space<vmem>>, vector<2x16x128xf32>
    %c0_58 = arith.constant 0 : index
    %c1_59 = arith.constant 1 : index
    %c0_60 = arith.constant 0 : index
    %59 = vector.load %arg16[%c0_58, %c1_59, %c0_60] : memref<2x24x128xf32, #tpu.memory_space<vmem>>, vector<2x16x128xf32>
    %c0_61 = arith.constant 0 : index
    %c2_62 = arith.constant 2 : index
    %c0_63 = arith.constant 0 : index
    %60 = vector.load %arg16[%c0_61, %c2_62, %c0_63] : memref<2x24x128xf32, #tpu.memory_space<vmem>>, vector<2x16x128xf32>
    %c0_64 = arith.constant 0 : index
    %c3 = arith.constant 3 : index
    %c0_65 = arith.constant 0 : index
    %61 = vector.load %arg16[%c0_64, %c3, %c0_65] : memref<2x24x128xf32, #tpu.memory_space<vmem>>, vector<2x16x128xf32>
    %c0_66 = arith.constant 0 : index
    %c4_67 = arith.constant 4 : index
    %c0_68 = arith.constant 0 : index
    %62 = vector.load %arg16[%c0_66, %c4_67, %c0_68] : memref<2x24x128xf32, #tpu.memory_space<vmem>>, vector<2x16x128xf32>
    %c0_69 = arith.constant 0 : index
    %c5 = arith.constant 5 : index
    %c0_70 = arith.constant 0 : index
    %63 = vector.load %arg16[%c0_69, %c5, %c0_70] : memref<2x24x128xf32, #tpu.memory_space<vmem>>, vector<2x16x128xf32>
    %c0_71 = arith.constant 0 : index
    %c6 = arith.constant 6 : index
    %c0_72 = arith.constant 0 : index
    %64 = vector.load %arg16[%c0_71, %c6, %c0_72] : memref<2x24x128xf32, #tpu.memory_space<vmem>>, vector<2x16x128xf32>
    %c0_73 = arith.constant 0 : index
    %c7 = arith.constant 7 : index
    %c0_74 = arith.constant 0 : index
    %65 = vector.load %arg16[%c0_73, %c7, %c0_74] : memref<2x24x128xf32, #tpu.memory_space<vmem>>, vector<2x16x128xf32>
    %c0_75 = arith.constant 0 : index
    %c8 = arith.constant 8 : index
    %c0_76 = arith.constant 0 : index
    %66 = vector.load %arg16[%c0_75, %c8, %c0_76] : memref<2x24x128xf32, #tpu.memory_space<vmem>>, vector<2x16x128xf32>
    %67 = tpu.concatenate %58, %59, %60, %61, %62, %63, %64, %65, %66 in 2 : vector<2x16x128xf32>, vector<2x16x128xf32>, vector<2x16x128xf32>, vector<2x16x128xf32>, vector<2x16x128xf32>, vector<2x16x128xf32>, vector<2x16x128xf32>, vector<2x16x128xf32>, vector<2x16x128xf32> -> vector<2x16x1152xf32>
    %68 = vector.shape_cast %67 : vector<2x16x1152xf32> to vector<32x1152xf32>
    %c0_77 = arith.constant 0 : index
    %c0_78 = arith.constant 0 : index
    %69 = vector.load %arg10[%c0_77, %c0_78] : memref<1152x128xf32, #tpu.memory_space<vmem>>, vector<1152x128xf32>
    %cst_79 = arith.constant dense<0.000000e+00> : vector<32x128xf32>
    %70 = tpu.matmul %68, %69, %cst_79 {dimension_numbers = #tpu.dot_dimension_numbers<[1], [0], [0], [1], [0, 0, 1, 1], [], []>} : vector<32x1152xf32>, vector<1152x128xf32>, vector<32x128xf32> -> vector<32x128xf32>
    %c0_80 = arith.constant 0 : index
    %c0_81 = arith.constant 0 : index
    %71 = vector.load %arg11[%c0_80, %c0_81] : memref<1x128xf32, #tpu.memory_space<vmem>>, vector<1x128xf32>
    %72 = vector.broadcast %71 : vector<1x128xf32> to vector<32x128xf32>
    %73 = arith.addf %70, %72 : vector<32x128xf32>
    %cst_82 = arith.constant 0.000000e+00 : f32
    %74 = vector.broadcast %cst_82 : f32 to vector<32x128xf32>
    %75 = arith.maximumf %73, %74 : vector<32x128xf32>
    %c0_83 = arith.constant 0 : index
    %c0_84 = arith.constant 0 : index
    %76 = vector.load %arg12[%c0_83, %c0_84] : memref<128x128xf32, #tpu.memory_space<vmem>>, vector<128x128xf32>
    %cst_85 = arith.constant dense<0.000000e+00> : vector<32x128xf32>
    %77 = tpu.matmul %75, %76, %cst_85 {dimension_numbers = #tpu.dot_dimension_numbers<[1], [0], [0], [1], [0, 0, 1, 1], [], []>} : vector<32x128xf32>, vector<128x128xf32>, vector<32x128xf32> -> vector<32x128xf32>
    %c0_86 = arith.constant 0 : index
    %c0_87 = arith.constant 0 : index
    %78 = vector.load %arg13[%c0_86, %c0_87] : memref<1x128xf32, #tpu.memory_space<vmem>>, vector<1x128xf32>
    %79 = vector.broadcast %78 : vector<1x128xf32> to vector<32x128xf32>
    %80 = arith.addf %77, %79 : vector<32x128xf32>
    %cst_88 = arith.constant 0.000000e+00 : f32
    %81 = vector.broadcast %cst_88 : f32 to vector<32x128xf32>
    %82 = arith.maximumf %80, %81 : vector<32x128xf32>
    %83 = math.absf %82 : vector<32x128xf32>
    %cst_89 = arith.constant 0.000000e+00 : f32
    %84 = vector.broadcast %cst_89 : f32 to vector<32x128xf32>
    %85 = arith.subf %84, %83 : vector<32x128xf32>
    %86 = math.exp %85 : vector<32x128xf32>
    %cst_90 = arith.constant 1.000000e+00 : f32
    %87 = vector.broadcast %cst_90 : f32 to vector<32x128xf32>
    %88 = arith.addf %87, %86 : vector<32x128xf32>
    %89 = tpu.reciprocal %88 {approx = true} : vector<32x128xf32> -> vector<32x128xf32>
    %cst_91 = arith.constant 0.000000e+00 : f32
    %90 = vector.broadcast %cst_91 : f32 to vector<32x128xf32>
    %91 = arith.cmpf oge, %82, %90 : vector<32x128xf32>
    %92 = arith.mulf %86, %89 : vector<32x128xf32>
    %93 = arith.select %91, %89, %92 : vector<32x128xi1>, vector<32x128xf32>
    %94 = vector.shape_cast %17 : vector<32x128xf32> to vector<2x16x128xf32>
    %95 = vector.shape_cast %44 : vector<2x128xf32> to vector<2x1x128xf32>
    %96 = vector.shape_cast %93 : vector<32x128xf32> to vector<2x16x128xf32>
    %97 = vector.broadcast %95 : vector<2x1x128xf32> to vector<2x16x128xf32>
    %98 = arith.mulf %97, %96 : vector<2x16x128xf32>
    %cst_92 = arith.constant 1.000000e+00 : f32
    %99 = vector.broadcast %cst_92 : f32 to vector<2x16x128xf32>
    %100 = arith.addf %99, %98 : vector<2x16x128xf32>
    %101 = arith.mulf %94, %100 : vector<2x16x128xf32>
    %c0_93 = arith.constant 0 : index
    %c0_94 = arith.constant 0 : index
    %c0_95 = arith.constant 0 : index
    %102 = vector.load %arg14[%c0_93, %c0_94, %c0_95] : memref<2x16x128xf32, #tpu.memory_space<vmem>>, vector<2x16x128xf32>
    tpu.vector_store %arg14[%c0_93, %c0_94, %c0_95], %101 {strides = array<i32>} : memref<2x16x128xf32, #tpu.memory_space<vmem>>, vector<2x16x128xf32>,
    return
  }
  func.func @transform_0(%arg0: i32) -> (i32, i32, i32) {
    %c0_i32 = arith.constant 0 : i32
    %c0_i32_0 = arith.constant 0 : i32
    %c0_i32_1 = arith.constant 0 : i32
    return %arg0, %c0_i32, %c0_i32_0 : i32, i32, i32
  }
  func.func @transform_1(%arg0: i32) -> (i32, i32) {
    %c0_i32 = arith.constant 0 : i32
    %c0_i32_0 = arith.constant 0 : i32
    %c0_i32_1 = arith.constant 0 : i32
    return %c0_i32, %c0_i32_0 : i32, i32
  }
  func.func @transform_2(%arg0: i32) -> (i32, i32) {
    %c0_i32 = arith.constant 0 : i32
    %c0_i32_0 = arith.constant 0 : i32
    %c0_i32_1 = arith.constant 0 : i32
    return %c0_i32, %c0_i32_0 : i32, i32
  }
  func.func @transform_3(%arg0: i32) -> (i32, i32) {
    %c0_i32 = arith.constant 0 : i32
    %c0_i32_0 = arith.constant 0 : i32
    %c0_i32_1 = arith.constant 0 : i32
    return %c0_i32, %c0_i32_0 : i32, i32
  }
  func.func @transform_4(%arg0: i32) -> (i32, i32) {
    %c0_i32 = arith.constant 0 : i32
    %c0_i32_0 = arith.constant 0 : i32
    %c0_i32_1 = arith.constant 0 : i32
    return %c0_i32, %c0_i32_0 : i32, i32
  }
  func.func @transform_5(%arg0: i32) -> (i32, i32) {
    %c0_i32 = arith.constant 0 : i32
    %c0_i32_0 = arith.constant 0 : i32
    %c0_i32_1 = arith.constant 0 : i32
    return %c0_i32, %c0_i32_0 : i32, i32
  }
  func.func @transform_6(%arg0: i32) -> (i32, i32) {
    %c0_i32 = arith.constant 0 : i32
    %c0_i32_0 = arith.constant 0 : i32
    %c0_i32_1 = arith.constant 0 : i32
    return %c0_i32, %c0_i32_0 : i32, i32
  }
  func.func @transform_7(%arg0: i32) -> (i32, i32) {
    %c0_i32 = arith.constant 0 : i32
    %c0_i32_0 = arith.constant 0 : i32
    %c0_i32_1 = arith.constant 0 : i32
    return %c0_i32, %c0_i32_0 : i32, i32
  }
  func.func @transform_8(%arg0: i32) -> (i32, i32) {
    %c0_i32 = arith.constant 0 : i32
    %c0_i32_0 = arith.constant 0 : i32
    %c0_i32_1 = arith.constant 0 : i32
    return %c0_i32, %c0_i32_0 : i32, i32
  }
  func.func @transform_9(%arg0: i32) -> (i32, i32) {
    %c0_i32 = arith.constant 0 : i32
    %c0_i32_0 = arith.constant 0 : i32
    %c0_i32_1 = arith.constant 0 : i32
    return %c0_i32, %c0_i32_0 : i32, i32
  }
  func.func @transform_10(%arg0: i32) -> (i32, i32) {
    %c0_i32 = arith.constant 0 : i32
    %c0_i32_0 = arith.constant 0 : i32
    %c0_i32_1 = arith.constant 0 : i32
    return %c0_i32, %c0_i32_0 : i32, i32
  }
  func.func @transform_11(%arg0: i32) -> (i32, i32) {
    %c0_i32 = arith.constant 0 : i32
    %c0_i32_0 = arith.constant 0 : i32
    %c0_i32_1 = arith.constant 0 : i32
    return %c0_i32, %c0_i32_0 : i32, i32
  }
  func.func @transform_12(%arg0: i32) -> (i32, i32) {
    %c0_i32 = arith.constant 0 : i32
    %c0_i32_0 = arith.constant 0 : i32
    %c0_i32_1 = arith.constant 0 : i32
    return %c0_i32, %c0_i32_0 : i32, i32
  }
  func.func @transform_13(%arg0: i32) -> (i32, i32, i32) {
    %c0_i32 = arith.constant 0 : i32
    %c0_i32_0 = arith.constant 0 : i32
    %c0_i32_1 = arith.constant 0 : i32
    return %arg0, %c0_i32, %c0_i32_0 : i32, i32, i32
  }
}

</mosaic_0001>

<bundles_post_ra>
// kernel: prm_forward.1
= control target key start
LH: loop header
LB: loop body
LE: loop exit
PB: predicated region body
PF: predicated region fallthrough
CT: control target
= control target key end

     0   :  { %v2067_v3 = vmov 0.0   ;;  %vm2068_vm0 = vmmov 0   ;;  %vm336_vm1 = vcmask 1041409   ;;  %s3069_s1 = inlined_call_operand.vmem [shape: f32[384,128], index: 1, kind: input, shape index: {}]   ;;  %s3070_s0 = inlined_call_operand.vmem [shape: f32[2,16,128], index: 0, kind: input, shape index: {}]   ;;  %s3071_s3 = inlined_call_operand.vmem [shape: f32[128,128], index: 3, kind: input, shape index: {}]   ;;  %s3072_s7 = inlined_call_operand.vmem [shape: f32[128,128], index: 7, kind: input, shape index: {}]   ;;  %s3073_s5 = inlined_call_operand.vmem [shape: f32[128,128], index: 5, kind: input, shape index: {}]   ;;  %s3074_s2 = inlined_call_operand.vmem [shape: f32[1,128], index: 2, kind: input, shape index: {}]   ;;  %s3075_s9 = inlined_call_operand.vmem [shape: f32[1152,128], index: 9, kind: input, shape index: {}]   ;;  %s3076_s4 = inlined_call_operand.vmem [shape: f32[1,128], index: 4, kind: input, shape index: {}]   ;;  %s3077_s8 = inlined_call_operand.vmem [shape: f32[1,128], index: 8, kind: input, shape index: {}]   ;;  %s3078_s11 = inlined_call_operand.vmem [shape: f32[128,128], index: 11, kind: input, shape index: {}]   ;;  %s3079_s10 = inlined_call_operand.vmem [shape: f32[1,128], index: 10, kind: input, shape index: {}]   ;;  %s3080_s6 = inlined_call_operand.vmem [shape: f32[1,128], index: 6, kind: input, shape index: {}]   ;;  %s3081_s12 = inlined_call_operand.vmem [shape: f32[1,128], index: 12, kind: input, shape index: {}]   ;;  %s3082_s13 = inlined_call_operand.vmem [shape: f32[2,16,128], index: 13, kind: output, shape index: {}]  }
   0x1   :  { %v99_v0 = vld [vmem:[%s3069_s1 + $0xf8] sm:$0xff]  ;;  %v98_v2 = vld [vmem:[%s3069_s1 + $0xf0] sm:$0xff]  ;;  %48 = vst [vmem:[#allocation2] sm:$0x1] %v2067_v3  ;;  %49 = vst [vmem:[#allocation2 + $0x18] sm:$0x1] %v2067_v3 }
   0x2   :  { %v83_v1 = vld [vmem:[%s3069_s1 + $0x78] sm:$0xff]  ;;  %50 = vst [vmem:[#allocation2 + $0x11] sm:$0x1] %v2067_v3  ;;  %51 = vst [vmem:[#allocation2 + $0x29] sm:$0x1] %v2067_v3  ;;  %1456 = vmatprep.subr.mxu0 %v99_v0  ;;  %v82_v4 = vld [vmem:[%s3069_s1 + $0x70] sm:$0xff] }
   0x3   :  { %625 = vst [vmem:[#allocation3] sm:$0xf] %v2067_v3  ;;  %626 = vst [vmem:[#allocation3 + $0x18] sm:$0xf] %v2067_v3  ;;  %v115_v5 = vld [vmem:[%s3069_s1 + $0x178] sm:$0xff]  ;;  %1457 = vmatpush3.msra.mxu0 %v83_v1  ;;  %v97_v6 = vld [vmem:[%s3069_s1 + $0xe8] sm:$0xff] }
   0x4   :  { %627 = vst [vmem:[#allocation3 + $0x14] sm:$0xf] %v2067_v3  ;;  %628 = vst [vmem:[#allocation3 + $0x2c] sm:$0xf] %v2067_v3  ;;  %1790 = vmatprep.subr.mxu1 %v115_v5  ;;  %v114_v7 = vld [vmem:[%s3069_s1 + $0x170] sm:$0xff]  ;;  %1458 = vmatprep.subr.mxu0 %v98_v2  ;;  %v81_v8 = vld [vmem:[%s3069_s1 + $0x68] sm:$0xff] }
   0x5   :  { %1791 = vmatpush3.msra.mxu1 %v115_v5  ;;  %v113_v9 = vld [vmem:[%s3069_s1 + $0x168] sm:$0xff]  ;;  %1459 = vmatpush3.msra.mxu0 %v82_v4  ;;  %v96_v10 = vld [vmem:[%s3069_s1 + $0xe0] sm:$0xff]  ;;  %v95_v13 = vld [vmem:[%s3069_s1 + $0xd8] sm:$0xff] }
   0x6   :  { %1792 = vmatprep.subr.mxu1 %v114_v7  ;;  %1460 = vmatprep.subr.mxu0 %v97_v6  ;;  %v80_v11 = vld [vmem:[%s3069_s1 + $0x60] sm:$0xff]  ;;  %v79_v14 = vld [vmem:[%s3069_s1 + $0x58] sm:$0xff]  ;;  %v94_v16 = vld [vmem:[%s3069_s1 + $0xd0] sm:$0xff] }
   0x7   :  { %1793 = vmatpush3.msra.mxu1 %v114_v7  ;;  %v112_v12 = vld [vmem:[%s3069_s1 + $0x160] sm:$0xff]  ;;  %1461 = vmatpush3.msra.mxu0 %v81_v8  ;;  %v111_v15 = vld [vmem:[%s3069_s1 + $0x158] sm:$0xff]  ;;  %v78_v17 = vld [vmem:[%s3069_s1 + $0x50] sm:$0xff] }
   0x8   :  { %1794 = vmatprep.subr.mxu1 %v113_v9  ;;  %1462 = vmatprep.subr.mxu0 %v96_v10  ;;  %v110_v18 = vld [vmem:[%s3069_s1 + $0x150] sm:$0xff]  ;;  %v93_v19 = vld [vmem:[%s3069_s1 + $0xc8] sm:$0xff]  ;;  %v92_v22 = vld [vmem:[%s3069_s1 + $0xc0] sm:$0xff] }
   0x9   :  { %1795 = vmatpush3.msra.mxu1 %v113_v9  ;;  %1463 = vmatpush3.msra.mxu0 %v80_v11  ;;  %v77_v20 = vld [vmem:[%s3069_s1 + $0x48] sm:$0xff]  ;;  %v76_v23 = vld [vmem:[%s3069_s1 + $0x40] sm:$0xff]  ;;  %v91_v25 = vld [vmem:[%s3069_s1 + $0xb8] sm:$0xff] }
   0xa   :  { %1796 = vmatprep.subr.mxu1 %v112_v12  ;;  %1464 = vmatprep.subr.mxu0 %v95_v13  ;;  %v109_v21 = vld [vmem:[%s3069_s1 + $0x148] sm:$0xff]  ;;  %v108_v24 = vld [vmem:[%s3069_s1 + $0x140] sm:$0xff]  ;;  %v75_v26 = vld [vmem:[%s3069_s1 + $0x38] sm:$0xff] }
   0xb   :  { %1797 = vmatpush3.msra.mxu1 %v112_v12  ;;  %1465 = vmatpush3.msra.mxu0 %v79_v14  ;;  %v107_v27 = vld [vmem:[%s3069_s1 + $0x138] sm:$0xff]  ;;  %v44_v28 = vld [vmem:[%s3070_s0] sm:$0xff]  ;;  %v90_v29 = vld [vmem:[%s3069_s1 + $0xb0] sm:$0xff] }
   0xc   :  { %1798 = vmatprep.subr.mxu1 %v111_v15  ;;  %1466 = vmatprep.subr.mxu0 %v94_v16  ;;  %52 = vst [vmem:[#allocation2 + $0x1] sm:$0xff] %v44_v28  ;;  %v45_v30 = vld [vmem:[%s3070_s0 + $0x8] sm:$0xff]  ;;  %v2241_v31 = vld [vmem:[%s3070_s0 + $0x10] sm:$0xff]  ;;  %v2253_v34 = vld [vmem:[%s3070_s0 + $0x18] sm:$0xff] }
   0xd   :  { %1799 = vmatpush3.msra.mxu1 %v111_v15  ;;  %1467 = vmatpush3.msra.mxu0 %v78_v17  ;;  %v74_v32 = vld [vmem:[%s3069_s1 + $0x30] sm:$0xff]  ;;  %53 = vst [vmem:[#allocation2 + $0x9] sm:$0xff] %v45_v30  ;;  %54 = vst [vmem:[#allocation2 + $0x19] sm:$0xff] %v2241_v31  ;;  %v89_v35 = vld [vmem:[%s3069_s1 + $0xa8] sm:$0xff] }
   0xe   :  { %1800 = vmatprep.subr.mxu1 %v110_v18  ;;  %1468 = vmatprep.subr.mxu0 %v93_v19  ;;  %v106_v33 = vld [vmem:[%s3069_s1 + $0x130] sm:$0xff]  ;;  %55 = vst [vmem:[#allocation2 + $0x21] sm:$0xff] %v2253_v34  ;;  %v73_v36 = vld [vmem:[%s3069_s1 + $0x28] sm:$0xff]  ;;  %v88_v38 = vld [vmem:[%s3069_s1 + $0xa0] sm:$0xff] }
   0xf   :  { %1801 = vmatpush3.msra.mxu1 %v110_v18  ;;  %1469 = vmatpush3.msra.mxu0 %v77_v20  ;;  %v105_v37 = vld [vmem:[%s3069_s1 + $0x128] sm:$0xff]  ;;  %v72_v39 = vld [vmem:[%s3069_s1 + $0x20] sm:$0xff]  ;;  %v87_v41 = vld [vmem:[%s3069_s1 + $0x98] sm:$0xff] }
  0x10   :  { %1802 = vmatprep.subr.mxu1 %v109_v21  ;;  %1470 = vmatprep.subr.mxu0 %v92_v22  ;;  %v104_v40 = vld [vmem:[%s3069_s1 + $0x120] sm:$0xff]  ;;  %v71_v42 = vld [vmem:[%s3069_s1 + $0x18] sm:$0xff]  ;;  %v86_v44 = vld [vmem:[%s3069_s1 + $0x90] sm:$0xff] }
  0x11   :  { %1803 = vmatpush3.msra.mxu1 %v109_v21  ;;  %1471 = vmatpush3.msra.mxu0 %v76_v23  ;;  %v103_v43 = vld [vmem:[%s3069_s1 + $0x118] sm:$0xff]  ;;  %v70_v45 = vld [vmem:[%s3069_s1 + $0x10] sm:$0xff]  ;;  %v85_v47 = vld [vmem:[%s3069_s1 + $0x88] sm:$0xff] }
  0x12   :  { %1804 = vmatprep.subr.mxu1 %v108_v24  ;;  %1472 = vmatprep.subr.mxu0 %v91_v25  ;;  %v102_v46 = vld [vmem:[%s3069_s1 + $0x110] sm:$0xff]  ;;  %v69_v48 = vld [vmem:[%s3069_s1 + $0x8] sm:$0xff]  ;;  %v84_v49 = vld [vmem:[%s3069_s1 + $0x80] sm:$0xff] }
  0x13   :  { %1805 = vmatpush3.msra.mxu1 %v108_v24  ;;  %1473 = vmatpush3.msra.mxu0 %v75_v26  ;;  %v101_v50 = vld [vmem:[%s3069_s1 + $0x108] sm:$0xff]  ;;  %v68_v51 = vld [vmem:[%s3069_s1] sm:$0xff]  ;;  %v326_v61 = vld [vmem:[%s3071_s3 + $0x78] sm:$0xff] }
  0x14   :  { %1806 = vmatprep.subr.mxu1 %v107_v27  ;;  %1474 = vmatprep.subr.mxu0 %v90_v29  ;;  %v56_v52 = vld [vmem:[#allocation2] sm:$0xff]  ;;  %v65_v55 = vld [vmem:[#allocation2 + $0xa] sm:$0xff]  ;;  %v58_v59 = vld [vmem:[#allocation2 + $0x18] sm:$0xff] }
  0x15   :  { %1807 = vmatpush3.msra.mxu1 %v107_v27  ;;  %1475 = vmatpush3.msra.mxu0 %v74_v32  ;;  %v100_v53 = vld [vmem:[%s3069_s1 + $0x100] sm:$0xff]  ;;  %v57_v56 = vld [vmem:[#allocation2 + $0x8] sm:$0xff]  ;;  %v325_v62 = vld [vmem:[%s3071_s3 + $0x70] sm:$0xff] }
  0x16   :  { %1808 = vmatprep.subr.mxu1 %v106_v33  ;;  %1476 = vmatprep.subr.mxu0 %v89_v35  ;;  %v64_v54 = vld [vmem:[#allocation2 + $0x2] sm:$0xff]  ;;  %v66_v57 = vld [vmem:[#allocation2 + $0x1a] sm:$0xff]  ;;  %v321_v2 = vld [vmem:[%s3071_s3 + $0x50] sm:$0xff] }
  0x17   :  { %1809 = vmatpush3.msra.mxu1 %v106_v33  ;;  %1477 = vmatpush3.msra.mxu0 %v73_v36  ;;  %v67_v58 = vld [vmem:[#allocation2 + $0x22] sm:$0xff]  ;;  %v322_v1 = vld [vmem:[%s3071_s3 + $0x58] sm:$0xff]  ;;  %v317_v7 = vld [vmem:[%s3071_s3 + $0x30] sm:$0xff] }
  0x18   :  { %1810 = vmatprep.subr.mxu1 %v105_v37  ;;  %1478 = vmatprep.subr.mxu0 %v88_v38  ;;  %v59_v60 = vld [vmem:[#allocation2 + $0x20] sm:$0xff]  ;;  %v324_v63 = vld [vmem:[%s3071_s3 + $0x68] sm:$0xff]  ;;  %v318_v6 = vld [vmem:[%s3071_s3 + $0x38] sm:$0xff] }
  0x19   :  { %1811 = vmatpush3.msra.mxu1 %v105_v37  ;;  %1479 = vmatpush3.msra.mxu0 %v72_v39  ;;  %v323_v0 = vld [vmem:[%s3071_s3 + $0x60] sm:$0xff]  ;;  %v320_v4 = vld [vmem:[%s3071_s3 + $0x48] sm:$0xff]  ;;  %v314_v10 = vld [vmem:[%s3071_s3 + $0x18] sm:$0xff] }
  0x1a   :  { %1812 = vmatprep.subr.mxu1 %v104_v40  ;;  %1480 = vmatprep.subr.mxu0 %v87_v41  ;;  %v319_v5 = vld [vmem:[%s3071_s3 + $0x40] sm:$0xff]  ;;  %v316_v8 = vld [vmem:[%s3071_s3 + $0x28] sm:$0xff]  ;;  %v313_v11 = vld [vmem:[%s3071_s3 + $0x10] sm:$0xff] }
  0x1b   :  { %1813 = vmatpush3.msra.mxu1 %v104_v40  ;;  %1481 = vmatpush3.msra.mxu0 %v71_v42  ;;  %v315_v9 = vld [vmem:[%s3071_s3 + $0x20] sm:$0xff]  ;;  %v312_v12 = vld [vmem:[%s3071_s3 + $0x8] sm:$0xff]  ;;  %v2380_v14 = vld [vmem:[%s3072_s7 + $0x78] sm:$0xff] }
  0x1c   :  { %1814 = vmatprep.subr.mxu1 %v103_v43  ;;  %1482 = vmatprep.subr.mxu0 %v86_v44  ;;  %v311_v13 = vld [vmem:[%s3071_s3] sm:$0xff]  ;;  %v425_v15 = vld [vmem:[%s3073_s5 + $0x78] sm:$0xff]  ;;  %v424_v16 = vld [vmem:[%s3073_s5 + $0x70] sm:$0xff] }
  0x1d   :  { %1815 = vmatpush3.msra.mxu1 %v103_v43  ;;  %1483 = vmatpush3.msra.mxu0 %v70_v45  ;;  %v423_v17 = vld [vmem:[%s3073_s5 + $0x68] sm:$0xff]  ;;  %v422_v18 = vld [vmem:[%s3073_s5 + $0x60] sm:$0xff]  ;;  %v421_v19 = vld [vmem:[%s3073_s5 + $0x58] sm:$0xff] }
  0x1e   :  { %1816 = vmatprep.subr.mxu1 %v102_v46  ;;  %1484 = vmatprep.subr.mxu0 %v85_v47  ;;  %v420_v20 = vld [vmem:[%s3073_s5 + $0x50] sm:$0xff]  ;;  %v419_v21 = vld [vmem:[%s3073_s5 + $0x48] sm:$0xff]  ;;  %v418_v22 = vld [vmem:[%s3073_s5 + $0x40] sm:$0xff] }
  0x1f   :  { %187 = vmatprep.mubr.f32.mxu0 %v44_v28  ;;  %1485 = vmatpush3.msra.mxu0 %v69_v48  ;;  %v417_v23 = vld [vmem:[%s3073_s5 + $0x38] sm:$0xff]  ;;  %v416_v24 = vld [vmem:[%s3073_s5 + $0x30] sm:$0xff]  ;;  %v415_v25 = vld [vmem:[%s3073_s5 + $0x28] sm:$0xff] }
  0x20   :  { %1817 = vmatpush3.msra.mxu1 %v102_v46  ;;  %1486 = vmatprep.subr.mxu0 %v84_v49  ;;  %v414_v26 = vld [vmem:[%s3073_s5 + $0x20] sm:$0xff]  ;;  %v413_v27 = vld [vmem:[%s3073_s5 + $0x18] sm:$0xff] }
  0x21   :  { %1818 = vmatprep.subr.mxu1 %v101_v50  ;;  %1487 = vmatpush3.msra.mxu0 %v68_v51 }
  0x22   :  { %1819 = vmatpush3.msra.mxu1 %v101_v50  ;;  %188 = vmatmul.mubr.f32.vlgmr.msra.gmra.mxu0 %v56_v52 }
  0x23   :  { %1820 = vmatprep.subr.mxu1 %v100_v53  ;;  %192 = vmatprep.mubr.f32.mxu0 %v45_v30  ;;  %v1450_v30 = vld [vmem:[%s3074_s2] ss:$0 sm:$0xff] }
  0x24   :  { %1821 = vmatpush3.msra.mxu1 %v100_v53  ;;  %1822 = vmatprep.mubr.f32.mxu1 %v64_v54 }
  0x25   :  { %1828 = vmatprep.subr.mxu0 %v2067_v3  ;;  %1823 = vmatmul.mubr.f32.vlgmr.msra.gmra.mxu1 %v65_v55 }
  0x26   :  { %1863 = vmatprep.subr.mxu1 %v2067_v3  ;;  %193 = vmatmul.mubr.f32.gmra.mxu0 %v57_v56 }
  0x27   :  { %1825 = vmatprep.mubr.f32.mxu1 %v66_v57  ;;  %197 = vmatprep.mubr.f32.mxu0 %v2241_v31 }
  0x28   :  { %1829 = vmatpush3.msra.mxu0 %v326_v61  ;;  %1864 = vmatpush3.msra.mxu1 %v425_v15  ;;  %v521_v15 = vld [vmem:[%s3072_s7 + $0x40] sm:$0xff] }
  0x29   :  { %1826 = vmatmul.mubr.f32.gmra.mxu1 %v67_v58  ;;  %1830 = vmatprep.subr.mxu0 %v2067_v3 }
  0x2a   :  { %198 = vmatmul.mubr.f32.gmra.mxu0 %v58_v59  ;;  %1895 = vmatprep.mubr.msk.f32.mxu1 %vm2068_vm0, %v2067_v3 }
  0x2b   :  { %202 = vmatprep.mubr.f32.mxu0 %v2253_v34  ;;  %1831 = vmatpush3.msra.mxu0 %v325_v62 }
  0x2c   :  { %1832 = vmatprep.subr.mxu0 %v2067_v3  ;;  %1865 = vmatprep.subr.mxu1 %v2067_v3 }
  0x2d   :  { %1833 = vmatpush3.msra.mxu0 %v324_v63  ;;  %1866 = vmatpush3.msra.mxu1 %v424_v16  ;;  %v520_v16 = vld [vmem:[%s3072_s7 + $0x38] sm:$0xff] }
  0x2e   :  { %203 = vmatmul.mubr.f32.gmra.mxu0 %v59_v60  ;;  %1834 = vmatprep.subr.mxu0 %v2067_v3 }
  0x2f   :  { %1835 = vmatpush3.msra.mxu0 %v323_v0  ;;  %1860 = vmatprep.mubr.msk.f32.mxu0 %vm2068_vm0, %v2067_v3 }
  0x30   :  { %1836 = vmatprep.subr.mxu0 %v2067_v3  ;;  %1867 = vmatprep.subr.mxu1 %v2067_v3 }
  0x31   :  { %1837 = vmatpush3.msra.mxu0 %v322_v1  ;;  %1868 = vmatpush3.msra.mxu1 %v423_v17  ;;  %v519_v17 = vld [vmem:[%s3072_s7 + $0x30] sm:$0xff] }
  0x32   :  { %1838 = vmatprep.subr.mxu0 %v2067_v3  ;;  %1869 = vmatprep.subr.mxu1 %v2067_v3 }
  0x33   :  { %1839 = vmatpush3.msra.mxu0 %v321_v2  ;;  %1870 = vmatpush3.msra.mxu1 %v422_v18  ;;  %v518_v18 = vld [vmem:[%s3072_s7 + $0x28] sm:$0xff] }
  0x34   :  { %1840 = vmatprep.subr.mxu0 %v2067_v3  ;;  %1871 = vmatprep.subr.mxu1 %v2067_v3 }
  0x35   :  { %1841 = vmatpush3.msra.mxu0 %v320_v4  ;;  %1872 = vmatpush3.msra.mxu1 %v421_v19  ;;  %v517_v19 = vld [vmem:[%s3072_s7 + $0x20] sm:$0xff] }
  0x36   :  { %1842 = vmatprep.subr.mxu0 %v2067_v3  ;;  %1873 = vmatprep.subr.mxu1 %v2067_v3 }
  0x37   :  { %1843 = vmatpush3.msra.mxu0 %v319_v5  ;;  %1874 = vmatpush3.msra.mxu1 %v420_v20  ;;  %v516_v20 = vld [vmem:[%s3072_s7 + $0x18] sm:$0xff] }
  0x38   :  { %1844 = vmatprep.subr.mxu0 %v2067_v3  ;;  %1875 = vmatprep.subr.mxu1 %v2067_v3 }
  0x39   :  { %1845 = vmatpush3.msra.mxu0 %v318_v6  ;;  %1876 = vmatpush3.msra.mxu1 %v419_v21  ;;  %v515_v21 = vld [vmem:[%s3072_s7 + $0x10] sm:$0xff] }
  0x3a   :  { %1846 = vmatprep.subr.mxu0 %v2067_v3  ;;  %1877 = vmatprep.subr.mxu1 %v2067_v3 }
  0x3b   :  { %1847 = vmatpush3.msra.mxu0 %v317_v7  ;;  %1878 = vmatpush3.msra.mxu1 %v418_v22  ;;  %v514_v22 = vld [vmem:[%s3072_s7 + $0x8] sm:$0xff] }
  0x3c   :  { %1848 = vmatprep.subr.mxu0 %v2067_v3  ;;  %1879 = vmatprep.subr.mxu1 %v2067_v3 }
  0x3d   :  { %1849 = vmatpush3.msra.mxu0 %v316_v8  ;;  %1880 = vmatpush3.msra.mxu1 %v417_v23  ;;  %v513_v23 = vld [vmem:[%s3072_s7] sm:$0xff] }
  0x3e   :  { %1850 = vmatprep.subr.mxu0 %v2067_v3  ;;  %1881 = vmatprep.subr.mxu1 %v2067_v3 }
  0x3f   :  { %1851 = vmatpush3.msra.mxu0 %v315_v9  ;;  %1882 = vmatpush3.msra.mxu1 %v416_v24  ;;  %v527_v9 = vld [vmem:[%s3072_s7 + $0x70] sm:$0xff] }
  0x40   :  { %1852 = vmatprep.subr.mxu0 %v2067_v3  ;;  %1883 = vmatprep.subr.mxu1 %v2067_v3  ;;  %v412_v24 = vld [vmem:[%s3073_s5 + $0x10] sm:$0xff] }
  0x41   :  { %1853 = vmatpush3.msra.mxu0 %v314_v10  ;;  %1884 = vmatpush3.msra.mxu1 %v415_v25  ;;  %v526_v10 = vld [vmem:[%s3072_s7 + $0x68] sm:$0xff] }
  0x42   :  { %1854 = vmatprep.subr.mxu0 %v2067_v3  ;;  %1885 = vmatprep.subr.mxu1 %v2067_v3  ;;  %v411_v25 = vld [vmem:[%s3073_s5 + $0x8] sm:$0xff] }
  0x43   :  { %1855 = vmatpush3.msra.mxu0 %v313_v11  ;;  %1886 = vmatpush3.msra.mxu1 %v414_v26  ;;  %v525_v11 = vld [vmem:[%s3072_s7 + $0x60] sm:$0xff] }
  0x44   :  { %1856 = vmatprep.subr.mxu0 %v2067_v3  ;;  %1887 = vmatprep.subr.mxu1 %v2067_v3  ;;  %v410_v26 = vld [vmem:[%s3073_s5] sm:$0xff] }
  0x45   :  { %1857 = vmatpush3.msra.mxu0 %v312_v12  ;;  %1888 = vmatpush3.msra.mxu1 %v413_v27  ;;  %v524_v12 = vld [vmem:[%s3072_s7 + $0x58] sm:$0xff] }
  0x46   :  { %1858 = vmatprep.subr.mxu0 %v2067_v3  ;;  %1889 = vmatprep.subr.mxu1 %v2067_v3  ;;  %v700_v27 = vld [vmem:[%s3075_s9 + $0xf8] sm:$0xff] }
  0x47   :  { %1859 = vmatpush3.msra.mxu0 %v311_v13  ;;  %v523_v13 = vld [vmem:[%s3072_s7 + $0x50] sm:$0xff]  ;;  %1890 = vmatpush3.msra.mxu1 %v412_v24 }
  0x48   :  { %1898 = vmatprep.subr.mxu0 %v2380_v14  ;;  %1891 = vmatprep.subr.mxu1 %v2067_v3  ;;  %v675_v24 = vld [vmem:[%s3075_s9 + $0x30] sm:$0xff] }
  0x49   :  { %1892 = vmatpush3.msra.mxu1 %v411_v25  ;;  %v690_v25 = vld [vmem:[%s3075_s9 + $0xa8] sm:$0xff] }
  0x4a   :  { %1893 = vmatprep.subr.mxu1 %v2067_v3  ;;  %v715_v3 = vld [vmem:[%s3075_s9 + $0x170] sm:$0xff] }
  0x4b   :  { %1894 = vmatpush3.msra.mxu1 %v410_v26  ;;  %v674_v26 = vld [vmem:[%s3075_s9 + $0x28] sm:$0xff] }
  0x4c   :  { %1574 = vmatprep.subr.mxu1 %v700_v27  ;;  %v689_v27 = vld [vmem:[%s3075_s9 + $0xa0] sm:$0xff] }
  0xe2   :  { %v1488_v28 = vpop.f32.mrf.mxu0 }
  0xe4   :  { %v1489_v29 = vpop.f32.mrf.mxu0 }
  0xe5   :  { %v1490_v31 = vadd.f32 %v1489_v29, %v1488_v28  ;;  %v1824_v32 = vpop.f32.mrf.mxu1  ;;  %v732_v28 = vld [vmem:[%s3075_s9 + $0x1f8] sm:$0xff] }
  0xe6   :  { %v1491_v33 = vpop.f32.mrf.mxu0  ;;  %v716_v29 = vld [vmem:[%s3075_s9 + $0x178] sm:$0xff] }
  0xe7   :  { %v190_v34 = vadd.f32 %v1490_v31, %v1450_v30  ;;  %v274_v36 = vpop.f32.mrf.mxu1  ;;  %v730_v31 = vld [vmem:[%s3075_s9 + $0x1e8] sm:$0xff] }
  0xe8   :  { %v1492_v35 = vpop.f32.mrf.mxu0 }
  0xe9   :  { %v1493_v37 = vadd.f32 %v1492_v35, %v1491_v33  ;;  %v275_v40 = vadd.f32 %v274_v36, %v190_v34  ;;  %v1827_v42 = vpop.f32.mrf.mxu1  ;;  %v729_v33 = vld [vmem:[%s3075_s9 + $0x1e0] sm:$0xff]  ;;  %v728_v35 = vld [vmem:[%s3075_s9 + $0x1d8] sm:$0xff] }
  0xea   :  { %v1494_v38 = vpop.f32.mrf.mxu0  ;;  %v713_v34 = vld [vmem:[%s3075_s9 + $0x160] sm:$0xff]  ;;  %v712_v36 = vld [vmem:[%s3075_s9 + $0x158] sm:$0xff] }
  0xeb   :  { %v195_v39 = vadd.f32 %v1493_v37, %v1450_v30  ;;  %v2442_v47 = vmax.f32 %v275_v40, 0.0  ;;  %v284_v50 = vpop.f32.mrf.mxu1  ;;  %v727_v37 = vld [vmem:[%s3075_s9 + $0x1d0] sm:$0xff]  ;;  %v710_v40 = vld [vmem:[%s3075_s9 + $0x148] sm:$0xff] }
  0xec   :  { %v1495_v41 = vpop.f32.mrf.mxu0 }
  0xed   :  { %v280_v43 = vadd.f32 %v1824_v32, %v195_v39  ;;  %v1496_v44 = vadd.f32 %v1495_v41, %v1494_v38  ;;  %v714_v32 = vld [vmem:[%s3075_s9 + $0x168] sm:$0xff]  ;;  %v711_v38 = vld [vmem:[%s3075_s9 + $0x150] sm:$0xff]  ;;  %v725_v41 = vld [vmem:[%s3075_s9 + $0x1c0] sm:$0xff] }
  0xee   :  { %v1497_v45 = vpop.f32.mrf.mxu0  ;;  %v726_v39 = vld [vmem:[%s3075_s9 + $0x1c8] sm:$0xff] }
  0xef   :  { %v2440_v46 = vmax.f32 %v280_v43, 0.0  ;;  %v200_v48 = vadd.f32 %v1496_v44, %v1450_v30  ;;  %v724_v43 = vld [vmem:[%s3075_s9 + $0x1b8] sm:$0xff] }
  0xf0   :  { %v1498_v49 = vpop.f32.mrf.mxu0  ;;  %v708_v44 = vld [vmem:[%s3075_s9 + $0x138] sm:$0xff] }
  0xf1   :  { %v297_v51 = vadd.f32 %v2440_v46, %v2442_v47  ;;  %v1499_v52 = vadd.f32 %v1498_v49, %v1497_v45  ;;  %v285_v55 = vadd.f32 %v284_v50, %v200_v48  ;;  %v723_v45 = vld [vmem:[%s3075_s9 + $0x1b0] sm:$0xff]  ;;  %v722_v49 = vld [vmem:[%s3075_s9 + $0x1a8] sm:$0xff] }
  0xf2   :  { %v707_v48 = vld [vmem:[%s3075_s9 + $0x130] sm:$0xff]  ;;  %v706_v50 = vld [vmem:[%s3075_s9 + $0x128] sm:$0xff] }
  0xf3   :  { %v298_v53 = vrot.slane %v297_v51, 4  ;;  %v205_v54 = vadd.f32 %v1499_v52, %v1450_v30  ;;  %v2448_v59 = vmax.f32 %v285_v55, 0.0  ;;  %v731_v30 = vld [vmem:[%s3075_s9 + $0x1f0] sm:$0xff]  ;;  %v705_v52 = vld [vmem:[%s3075_s9 + $0x120] sm:$0xff] }
  0xf4   :  { %v719_v55 = vld [vmem:[%s3075_s9 + $0x190] sm:$0xff] }
  0xf5   :  { %v299_v56 = vadd.f32 %v298_v53, %v297_v51  ;;  %v290_v57 = vadd.f32 %v1827_v42, %v205_v54  ;;  %v709_v42 = vld [vmem:[%s3075_s9 + $0x140] sm:$0xff]  ;;  %v720_v53 = vld [vmem:[%s3075_s9 + $0x198] sm:$0xff] }
  0xf6   :  { %v721_v51 = vld [vmem:[%s3075_s9 + $0x1a0] sm:$0xff]  ;;  %v704_v54 = vld [vmem:[%s3075_s9 + $0x118] sm:$0xff] }
  0xf7   :  { %v2446_v58 = vmax.f32 %v290_v57, 0.0  ;;  %v300_v60 = vrot.slane %v299_v56, 2  ;;  %v718_v57 = vld [vmem:[%s3075_s9 + $0x188] sm:$0xff] }
  0xf9   :  { %v304_v61 = vadd.f32 %v2446_v58, %v2448_v59  ;;  %v301_v63 = vadd.f32 %v300_v60, %v299_v56  ;;  %v703_v56 = vld [vmem:[%s3075_s9 + $0x110] sm:$0xff]  ;;  %v702_v60 = vld [vmem:[%s3075_s9 + $0x108] sm:$0xff] }
  0xfb   :  { %v305_v62 = vrot.slane %v304_v61, 4  ;;  %v302_v2 = vrot.slane %v301_v63, 1 }
  0xfd   :  { %v306_v0 = vadd.f32 %v305_v62, %v304_v61  ;;  %v303_v6 = vadd.f32 %v302_v2, %v301_v63  ;;  %v717_v61 = vld [vmem:[%s3075_s9 + $0x180] sm:$0xff]  ;;  %v796_v63 = vld [vmem:[%s3075_s9 + $0x3f8] sm:$0xff] }
  0xfe   :  { %v701_v62 = vld [vmem:[%s3075_s9 + $0x100] sm:$0xff] }
  0xff   :  { %v307_v1 = vrot.slane %v306_v0, 2 }
 0x101   :  { %v308_v4 = vadd.f32 %v307_v1, %v306_v0  ;;  %v1451_v0 = vld [vmem:[%s3076_s4] ss:$0 sm:$0xff] }
 0x103   :  { %v309_v5 = vrot.slane %v308_v4, 1 }
 0x105   :  { %v310_v7 = vadd.f32 %v309_v5, %v308_v4 }
 0x107   :  { %v337_v8 = vsel %vm336_vm1, %v310_v7, %v303_v6  ;;  %v684_v6 = vld [vmem:[%s3075_s9 + $0x78] sm:$0xff]  ;;  %v699_v7 = vld [vmem:[%s3075_s9 + $0xf0] sm:$0xff] }
 0x108   :  { %1861 = vmatmul.mubr.f32.vlgmr.msra.gmra.mxu0 %v337_v8  ;;  %v683_v8 = vld [vmem:[%s3075_s9 + $0x70] sm:$0xff] }
 0x109   :  { %1899 = vmatpush3.msra.mxu0 %v2380_v14  ;;  %1930 = vmatprep.mubr.f32.mxu0 %v2442_v47  ;;  %v522_v14 = vld [vmem:[%s3072_s7 + $0x48] sm:$0xff] }
 0x10a   :  { %1900 = vmatprep.subr.mxu0 %v527_v9 }
 0x10b   :  { %1901 = vmatpush3.msra.mxu0 %v527_v9  ;;  %v698_v9 = vld [vmem:[%s3075_s9 + $0xe8] sm:$0xff] }
 0x10c   :  { %1902 = vmatprep.subr.mxu0 %v526_v10 }
 0x10d   :  { %1903 = vmatpush3.msra.mxu0 %v526_v10  ;;  %v682_v10 = vld [vmem:[%s3075_s9 + $0x68] sm:$0xff] }
 0x10e   :  { %1904 = vmatprep.subr.mxu0 %v525_v11 }
 0x10f   :  { %1905 = vmatpush3.msra.mxu0 %v525_v11  ;;  %v697_v11 = vld [vmem:[%s3075_s9 + $0xe0] sm:$0xff] }
 0x110   :  { %1906 = vmatprep.subr.mxu0 %v524_v12 }
 0x111   :  { %1907 = vmatpush3.msra.mxu0 %v524_v12  ;;  %v681_v12 = vld [vmem:[%s3075_s9 + $0x60] sm:$0xff] }
 0x112   :  { %1908 = vmatprep.subr.mxu0 %v523_v13 }
 0x113   :  { %1909 = vmatpush3.msra.mxu0 %v523_v13  ;;  %v696_v13 = vld [vmem:[%s3075_s9 + $0xd8] sm:$0xff] }
 0x114   :  { %1910 = vmatprep.subr.mxu0 %v522_v14 }
 0x115   :  { %1911 = vmatpush3.msra.mxu0 %v522_v14  ;;  %v680_v14 = vld [vmem:[%s3075_s9 + $0x58] sm:$0xff] }
 0x116   :  { %1912 = vmatprep.subr.mxu0 %v521_v15 }
 0x117   :  { %1913 = vmatpush3.msra.mxu0 %v521_v15  ;;  %v695_v15 = vld [vmem:[%s3075_s9 + $0xd0] sm:$0xff] }
 0x118   :  { %1914 = vmatprep.subr.mxu0 %v520_v16 }
 0x119   :  { %1915 = vmatpush3.msra.mxu0 %v520_v16  ;;  %v679_v16 = vld [vmem:[%s3075_s9 + $0x50] sm:$0xff] }
 0x11a   :  { %1916 = vmatprep.subr.mxu0 %v519_v17 }
 0x11b   :  { %1917 = vmatpush3.msra.mxu0 %v519_v17  ;;  %v694_v17 = vld [vmem:[%s3075_s9 + $0xc8] sm:$0xff] }
 0x11c   :  { %1918 = vmatprep.subr.mxu0 %v518_v18 }
 0x11d   :  { %1919 = vmatpush3.msra.mxu0 %v518_v18  ;;  %v678_v18 = vld [vmem:[%s3075_s9 + $0x48] sm:$0xff] }
 0x11e   :  { %1920 = vmatprep.subr.mxu0 %v517_v19 }
 0x11f   :  { %1921 = vmatpush3.msra.mxu0 %v517_v19  ;;  %v693_v19 = vld [vmem:[%s3075_s9 + $0xc0] sm:$0xff] }
 0x120   :  { %1922 = vmatprep.subr.mxu0 %v516_v20 }
 0x121   :  { %1923 = vmatpush3.msra.mxu0 %v516_v20  ;;  %v677_v20 = vld [vmem:[%s3075_s9 + $0x40] sm:$0xff] }
 0x122   :  { %1924 = vmatprep.subr.mxu0 %v515_v21 }
 0x123   :  { %1925 = vmatpush3.msra.mxu0 %v515_v21  ;;  %v692_v21 = vld [vmem:[%s3075_s9 + $0xb8] sm:$0xff] }
 0x124   :  { %1926 = vmatprep.subr.mxu0 %v514_v22 }
 0x125   :  { %1927 = vmatpush3.msra.mxu0 %v514_v22  ;;  %v676_v22 = vld [vmem:[%s3075_s9 + $0x38] sm:$0xff] }
 0x126   :  { %1928 = vmatprep.subr.mxu0 %v513_v23 }
 0x127   :  { %1929 = vmatpush3.msra.mxu0 %v513_v23  ;;  %v691_v23 = vld [vmem:[%s3075_s9 + $0xb0] sm:$0xff] }
 0x128   :  { %1931 = vmatmul.mubr.f32.vlgmr.msra.gmra.mxu0 %v2440_v46  ;;  %1618 = vmatprep.subr.mxu0 %v732_v28  ;;  %v673_v28 = vld [vmem:[%s3075_s9 + $0x20] sm:$0xff] }
 0x129   :  { %1933 = vmatprep.mubr.f32.mxu0 %v2448_v59  ;;  %1619 = vmatpush3.msra.mxu0 %v716_v29  ;;  %v688_v29 = vld [vmem:[%s3075_s9 + $0x98] sm:$0xff] }
 0x12a   :  { %1620 = vmatprep.subr.mxu0 %v731_v30  ;;  %v672_v30 = vld [vmem:[%s3075_s9 + $0x18] sm:$0xff] }
 0x12b   :  { %1621 = vmatpush3.msra.mxu0 %v715_v3  ;;  %v687_v3 = vld [vmem:[%s3075_s9 + $0x90] sm:$0xff] }
 0x12c   :  { %1934 = vmatmul.mubr.f32.gmra.mxu0 %v2446_v58  ;;  %1622 = vmatprep.subr.mxu0 %v730_v31  ;;  %v671_v31 = vld [vmem:[%s3075_s9 + $0x10] sm:$0xff] }
 0x12d   :  { %1623 = vmatpush3.msra.mxu0 %v714_v32  ;;  %v1453_v32 = vld [vmem:[%s3077_s8] ss:$0 sm:$0xff] }
 0x12e   :  { %1624 = vmatprep.subr.mxu0 %v729_v33  ;;  %v686_v33 = vld [vmem:[%s3075_s9 + $0x88] sm:$0xff] }
 0x12f   :  { %1625 = vmatpush3.msra.mxu0 %v713_v34  ;;  %v670_v34 = vld [vmem:[%s3075_s9 + $0x8] sm:$0xff] }
 0x130   :  { %1626 = vmatprep.subr.mxu0 %v728_v35 }
 0x131   :  { %1627 = vmatpush3.msra.mxu0 %v712_v36  ;;  %v685_v36 = vld [vmem:[%s3075_s9 + $0x80] sm:$0xff] }
 0x132   :  { %1628 = vmatprep.subr.mxu0 %v727_v37 }
 0x133   :  { %1629 = vmatpush3.msra.mxu0 %v711_v38  ;;  %v669_v38 = vld [vmem:[%s3075_s9] sm:$0xff] }
 0x134   :  { %1630 = vmatprep.subr.mxu0 %v726_v39 }
 0x135   :  { %1631 = vmatpush3.msra.mxu0 %v710_v40  ;;  %v764_v40 = vld [vmem:[%s3075_s9 + $0x2f8] sm:$0xff] }
 0x136   :  { %1632 = vmatprep.subr.mxu0 %v725_v41 }
 0x137   :  { %1633 = vmatpush3.msra.mxu0 %v709_v42 }
 0x138   :  { %1634 = vmatprep.subr.mxu0 %v724_v43 }
 0x139   :  { %1635 = vmatpush3.msra.mxu0 %v708_v44 }
 0x13a   :  { %1636 = vmatprep.subr.mxu0 %v723_v45 }
 0x13b   :  { %1637 = vmatpush3.msra.mxu0 %v707_v48 }
 0x13c   :  { %1638 = vmatprep.subr.mxu0 %v722_v49 }
 0x13d   :  { %1639 = vmatpush3.msra.mxu0 %v706_v50 }
 0x13e   :  { %1640 = vmatprep.subr.mxu0 %v721_v51 }
 0x13f   :  { %1641 = vmatpush3.msra.mxu0 %v705_v52  ;;  %v748_v52 = vld [vmem:[%s3075_s9 + $0x278] sm:$0xff] }
 0x140   :  { %1642 = vmatprep.subr.mxu0 %v720_v53  ;;  %v780_v53 = vld [vmem:[%s3075_s9 + $0x378] sm:$0xff] }
 0x141   :  { %1643 = vmatpush3.msra.mxu0 %v704_v54 }
 0x142   :  { %1644 = vmatprep.subr.mxu0 %v719_v55 }
 0x143   :  { %1645 = vmatpush3.msra.mxu0 %v703_v56 }
 0x144   :  { %1646 = vmatprep.subr.mxu0 %v718_v57 }
 0x145   :  { %1647 = vmatpush3.msra.mxu0 %v702_v60  ;;  %v763_v60 = vld [vmem:[%s3075_s9 + $0x2f0] sm:$0xff] }
 0x146   :  { %1648 = vmatprep.subr.mxu0 %v717_v61  ;;  %v795_v61 = vld [vmem:[%s3075_s9 + $0x3f0] sm:$0xff] }
 0x147   :  { %1649 = vmatpush3.msra.mxu0 %v701_v62  ;;  %v747_v62 = vld [vmem:[%s3075_s9 + $0x270] sm:$0xff] }
 0x148   :  { %1706 = vmatprep.subr.mxu0 %v796_v63 }
 0x1c8   :  { %v405_v1 = vpop.f32.mrf.mxu0 }
 0x1c9   :  { %v406_v2 = vadd.f32 %v1451_v0, %v405_v1  ;;  %v779_v1 = vld [vmem:[%s3075_s9 + $0x370] sm:$0xff] }
 0x1ca   :  { %v1862_v4 = vpop.f32.mrf.mxu0 }
 0x1cb   :  { %v409_v5 = vmax.f32 %v406_v2, 0.0  ;;  %v762_v2 = vld [vmem:[%s3075_s9 + $0x2e8] sm:$0xff] }
 0x1cc   :  { %v794_v4 = vld [vmem:[%s3075_s9 + $0x3e8] sm:$0xff] }
 0x1cd   :  { %1896 = vmatmul.mubr.f32.vlgmr.msra.gmra.mxu1 %v409_v5  ;;  %v746_v5 = vld [vmem:[%s3075_s9 + $0x268] sm:$0xff] }
 0x1ce   :  { %1575 = vmatpush3.msra.mxu1 %v684_v6  ;;  %v778_v6 = vld [vmem:[%s3075_s9 + $0x368] sm:$0xff] }
 0x1cf   :  { %1576 = vmatprep.subr.mxu1 %v699_v7 }
 0x1d0   :  { %1577 = vmatpush3.msra.mxu1 %v683_v8 }
 0x1d1   :  { %1578 = vmatprep.subr.mxu1 %v698_v9  ;;  %v761_v9 = vld [vmem:[%s3075_s9 + $0x2e0] sm:$0xff] }
 0x1d2   :  { %1579 = vmatpush3.msra.mxu1 %v682_v10  ;;  %v793_v10 = vld [vmem:[%s3075_s9 + $0x3e0] sm:$0xff] }
 0x1d3   :  { %1580 = vmatprep.subr.mxu1 %v697_v11  ;;  %v745_v11 = vld [vmem:[%s3075_s9 + $0x260] sm:$0xff] }
 0x1d4   :  { %1581 = vmatpush3.msra.mxu1 %v681_v12 }
 0x1d5   :  { %1582 = vmatprep.subr.mxu1 %v696_v13 }
 0x1d6   :  { %1583 = vmatpush3.msra.mxu1 %v680_v14  ;;  %v777_v14 = vld [vmem:[%s3075_s9 + $0x360] sm:$0xff] }
 0x1d7   :  { %1584 = vmatprep.subr.mxu1 %v695_v15  ;;  %v760_v15 = vld [vmem:[%s3075_s9 + $0x2d8] sm:$0xff] }
 0x1d8   :  { %1585 = vmatpush3.msra.mxu1 %v679_v16  ;;  %v792_v16 = vld [vmem:[%s3075_s9 + $0x3d8] sm:$0xff] }
 0x1d9   :  { %1586 = vmatprep.subr.mxu1 %v694_v17  ;;  %v744_v17 = vld [vmem:[%s3075_s9 + $0x258] sm:$0xff] }
 0x1da   :  { %1587 = vmatpush3.msra.mxu1 %v678_v18  ;;  %v776_v18 = vld [vmem:[%s3075_s9 + $0x358] sm:$0xff] }
 0x1db   :  { %1588 = vmatprep.subr.mxu1 %v693_v19 }
 0x1dc   :  { %1589 = vmatpush3.msra.mxu1 %v677_v20 }
 0x1dd   :  { %1590 = vmatprep.subr.mxu1 %v692_v21  ;;  %v759_v21 = vld [vmem:[%s3075_s9 + $0x2d0] sm:$0xff] }
 0x1de   :  { %1591 = vmatpush3.msra.mxu1 %v676_v22  ;;  %v791_v22 = vld [vmem:[%s3075_s9 + $0x3d0] sm:$0xff] }
 0x1df   :  { %1592 = vmatprep.subr.mxu1 %v691_v23  ;;  %v743_v23 = vld [vmem:[%s3075_s9 + $0x250] sm:$0xff] }
 0x1e0   :  { %1593 = vmatpush3.msra.mxu1 %v675_v24 }
 0x1e1   :  { %1594 = vmatprep.subr.mxu1 %v690_v25 }
 0x1e2   :  { %1595 = vmatpush3.msra.mxu1 %v674_v26  ;;  %v775_v26 = vld [vmem:[%s3075_s9 + $0x350] sm:$0xff] }
 0x1e3   :  { %1596 = vmatprep.subr.mxu1 %v689_v27  ;;  %v758_v27 = vld [vmem:[%s3075_s9 + $0x2c8] sm:$0xff] }
 0x1e4   :  { %1597 = vmatpush3.msra.mxu1 %v673_v28  ;;  %v790_v28 = vld [vmem:[%s3075_s9 + $0x3c8] sm:$0xff] }
 0x1e5   :  { %1598 = vmatprep.subr.mxu1 %v688_v29  ;;  %v742_v29 = vld [vmem:[%s3075_s9 + $0x248] sm:$0xff] }
 0x1e6   :  { %1599 = vmatpush3.msra.mxu1 %v672_v30  ;;  %v774_v30 = vld [vmem:[%s3075_s9 + $0x348] sm:$0xff] }
 0x1e7   :  { %1600 = vmatprep.subr.mxu1 %v687_v3 }
 0x1e8   :  { %v1932_v35 = vpop.f32.mrf.mxu0  ;;  %1601 = vmatpush3.msra.mxu1 %v671_v31 }
 0x1e9   :  { %v2711_v37 = vadd.f32 %v1932_v35, %v1453_v32  ;;  %1602 = vmatprep.subr.mxu1 %v686_v33  ;;  %v789_v33 = vld [vmem:[%s3075_s9 + $0x3c0] sm:$0xff] }
 0x1ea   :  { %v602_v39 = vpop.f32.mrf.mxu0  ;;  %1603 = vmatpush3.msra.mxu1 %v670_v34  ;;  %v741_v35 = vld [vmem:[%s3075_s9 + $0x240] sm:$0xff] }
 0x1eb   :  { %v622_v41 = vmax.f32 %v2711_v37, 0.0  ;;  %v2720_v42 = vadd.f32 %v1453_v32, %v602_v39  ;;  %1604 = vmatprep.subr.mxu1 %v685_v36  ;;  %v773_v36 = vld [vmem:[%s3075_s9 + $0x340] sm:$0xff]  ;;  %v756_v39 = vld [vmem:[%s3075_s9 + $0x2b8] sm:$0xff]  ;;  %v807_v37 = vld [vmem:[%s3075_s9 + $0x450] sm:$0xff] }
 0x1ec   :  { %v1935_v43 = vpop.f32.mrf.mxu0  ;;  %1605 = vmatpush3.msra.mxu1 %v669_v38 }
 0x1ed   :  { %630 = vst [vmem:[#allocation3 + $0xc] sm:$0xff] %v622_v41  ;;  %v621_v44 = vmax.f32 %v2720_v42, 0.0  ;;  %v2725_v45 = vadd.f32 %v1935_v43, %v1453_v32  ;;  %1662 = vmatprep.subr.mxu1 %v764_v40  ;;  %v788_v40 = vld [vmem:[%s3075_s9 + $0x3b8] sm:$0xff] }
 0x1ee   :  { %v612_v48 = vpop.f32.mrf.mxu0  ;;  %v740_v43 = vld [vmem:[%s3075_s9 + $0x238] sm:$0xff] }
 0x1ef   :  { %629 = vst [vmem:[#allocation3 + $0x4] sm:$0xff] %v621_v44  ;;  %v624_v49 = vmax.f32 %v2725_v45, 0.0  ;;  %v2730_v50 = vadd.f32 %v1453_v32, %v612_v48  ;;  %v757_v32 = vld [vmem:[%s3075_s9 + $0x2c0] sm:$0xff]  ;;  %v772_v48 = vld [vmem:[%s3075_s9 + $0x338] sm:$0xff]  ;;  %v802_v45 = vld [vmem:[%s3075_s9 + $0x428] sm:$0xff] }
 0x1f1   :  { %632 = vst [vmem:[#allocation3 + $0x24] sm:$0xff] %v624_v49  ;;  %v623_v51 = vmax.f32 %v2730_v50, 0.0  ;;  %v804_v50 = vld [vmem:[%s3075_s9 + $0x438] sm:$0xff] }
 0x1f3   :  { %631 = vst [vmem:[#allocation3 + $0x1c] sm:$0xff] %v623_v51 }
 0x1f6   :  { %v637_v54 = vld [vmem:[#allocation3 + $0x1] sm:$0xff]  ;;  %v638_v63 = vld [vmem:[#allocation3 + $0x9] sm:$0xff] }
 0x1f7   :  { %v645_v55 = vld [vmem:[#allocation3 + $0x3] sm:$0xff]  ;;  %884 = vmatprep.mubr.f32.mxu1 %v637_v54  ;;  %v646_v0 = vld [vmem:[#allocation3 + $0xb] sm:$0xff] }
 0x1f8   :  { %v633_v56 = vld [vmem:[#allocation3] sm:$0xff]  ;;  %969 = vmatprep.mubr.f32.mxu0 %v645_v55  ;;  %v2767_v7 = vld [vmem:[#allocation3 + $0x8] sm:$0xff] }
 0x1f9   :  { %v641_v57 = vld [vmem:[#allocation3 + $0x2] sm:$0xff]  ;;  %885 = vmatmul.mubr.f32.vlgmr.msra.gmra.mxu1 %v633_v56  ;;  %v642_v8 = vld [vmem:[#allocation3 + $0xa] sm:$0xff]  ;;  %v754_v56 = vld [vmem:[%s3075_s9 + $0x2a8] sm:$0xff] }
 0x1fa   :  { %970 = vmatmul.mubr.f32.vlgmr.msra.gmra.mxu0 %v641_v57  ;;  %1663 = vmatpush3.msra.mxu1 %v748_v52  ;;  %v639_v12 = vld [vmem:[#allocation3 + $0x19] sm:$0xff]  ;;  %v640_v24 = vld [vmem:[#allocation3 + $0x21] sm:$0xff] }
 0x1fb   :  { %1707 = vmatpush3.msra.mxu0 %v780_v53  ;;  %889 = vmatprep.mubr.f32.mxu1 %v638_v63  ;;  %v647_v13 = vld [vmem:[#allocation3 + $0x1b] sm:$0xff]  ;;  %v648_v25 = vld [vmem:[#allocation3 + $0x23] sm:$0xff]  ;;  %v785_v63 = vld [vmem:[%s3075_s9 + $0x3a0] sm:$0xff] }
 0x1fc   :  { %974 = vmatprep.mubr.f32.mxu0 %v646_v0  ;;  %1664 = vmatprep.subr.mxu1 %v763_v60  ;;  %v635_v19 = vld [vmem:[#allocation3 + $0x18] sm:$0xff]  ;;  %v2818_v3 = vld [vmem:[#allocation3 + $0x20] sm:$0xff]  ;;  %v737_v0 = vld [vmem:[%s3075_s9 + $0x220] sm:$0xff] }
 0x1fd   :  { %1708 = vmatprep.subr.mxu0 %v795_v61  ;;  %1665 = vmatpush3.msra.mxu1 %v747_v62  ;;  %v643_v20 = vld [vmem:[#allocation3 + $0x1a] sm:$0xff]  ;;  %v644_v31 = vld [vmem:[#allocation3 + $0x22] sm:$0xff]  ;;  %v753_v62 = vld [vmem:[%s3075_s9 + $0x2a0] sm:$0xff] }
 0x1fe   :  { %1709 = vmatpush3.msra.mxu0 %v779_v1  ;;  %1666 = vmatprep.subr.mxu1 %v762_v2  ;;  %v653_v34 = vld [vmem:[#allocation3 + $0x5] sm:$0xff]  ;;  %v786_v57 = vld [vmem:[%s3075_s9 + $0x3a8] sm:$0xff]  ;;  %v769_v1 = vld [vmem:[%s3075_s9 + $0x320] sm:$0xff] }
 0x1ff   :  { %1710 = vmatprep.subr.mxu0 %v794_v4  ;;  %890 = vmatmul.mubr.f32.gmra.mxu1 %v2767_v7  ;;  %v661_v38 = vld [vmem:[#allocation3 + $0x7] sm:$0xff]  ;;  %v738_v60 = vld [vmem:[%s3075_s9 + $0x228] sm:$0xff] }
 0x200   :  { %975 = vmatmul.mubr.f32.gmra.mxu0 %v642_v8  ;;  %1667 = vmatpush3.msra.mxu1 %v746_v5  ;;  %v755_v52 = vld [vmem:[%s3075_s9 + $0x2b0] sm:$0xff]  ;;  %v770_v61 = vld [vmem:[%s3075_s9 + $0x328] sm:$0xff]  ;;  %v752_v2 = vld [vmem:[%s3075_s9 + $0x298] sm:$0xff] }
 0x201   :  { %1711 = vmatpush3.msra.mxu0 %v778_v6  ;;  %894 = vmatprep.mubr.f32.mxu1 %v639_v12  ;;  %v787_v53 = vld [vmem:[%s3075_s9 + $0x3b0] sm:$0xff]  ;;  %v784_v4 = vld [vmem:[%s3075_s9 + $0x398] sm:$0xff]  ;;  %v750_v12 = vld [vmem:[%s3075_s9 + $0x288] sm:$0xff] }
 0x202   :  { %979 = vmatprep.mubr.f32.mxu0 %v647_v13  ;;  %1668 = vmatprep.subr.mxu1 %v761_v9  ;;  %v739_v54 = vld [vmem:[%s3075_s9 + $0x230] sm:$0xff]  ;;  %v736_v5 = vld [vmem:[%s3075_s9 + $0x218] sm:$0xff]  ;;  %v782_v13 = vld [vmem:[%s3075_s9 + $0x388] sm:$0xff] }
 0x203   :  { %1712 = vmatprep.subr.mxu0 %v793_v10  ;;  %1669 = vmatpush3.msra.mxu1 %v745_v11  ;;  %v771_v55 = vld [vmem:[%s3075_s9 + $0x330] sm:$0xff]  ;;  %v768_v6 = vld [vmem:[%s3075_s9 + $0x318] sm:$0xff] }
 0x204   :  { %1713 = vmatpush3.msra.mxu0 %v777_v14  ;;  %1670 = vmatprep.subr.mxu1 %v760_v15  ;;  %v751_v8 = vld [vmem:[%s3075_s9 + $0x290] sm:$0xff]  ;;  %v734_v14 = vld [vmem:[%s3075_s9 + $0x208] sm:$0xff] }
 0x205   :  { %1714 = vmatprep.subr.mxu0 %v792_v16  ;;  %895 = vmatmul.mubr.f32.gmra.mxu1 %v635_v19  ;;  %v783_v9 = vld [vmem:[%s3075_s9 + $0x390] sm:$0xff]  ;;  %v766_v15 = vld [vmem:[%s3075_s9 + $0x308] sm:$0xff]  ;;  %v749_v16 = vld [vmem:[%s3075_s9 + $0x280] sm:$0xff] }
 0x206   :  { %980 = vmatmul.mubr.f32.gmra.mxu0 %v643_v20  ;;  %1671 = vmatpush3.msra.mxu1 %v744_v17  ;;  %v735_v10 = vld [vmem:[%s3075_s9 + $0x210] sm:$0xff]  ;;  %v781_v17 = vld [vmem:[%s3075_s9 + $0x380] sm:$0xff]  ;;  %v812_v20 = vld [vmem:[%s3075_s9 + $0x478] sm:$0xff] }
 0x207   :  { %1715 = vmatpush3.msra.mxu0 %v776_v18  ;;  %899 = vmatprep.mubr.f32.mxu1 %v640_v24  ;;  %v767_v11 = vld [vmem:[%s3075_s9 + $0x310] sm:$0xff]  ;;  %v733_v18 = vld [vmem:[%s3075_s9 + $0x200] sm:$0xff] }
 0x208   :  { %984 = vmatprep.mubr.f32.mxu0 %v648_v25  ;;  %1672 = vmatprep.subr.mxu1 %v759_v21  ;;  %v765_v19 = vld [vmem:[%s3075_s9 + $0x300] sm:$0xff]  ;;  %v657_v21 = vld [vmem:[#allocation3 + $0x6] sm:$0xff]  ;;  %v810_v25 = vld [vmem:[%s3075_s9 + $0x468] sm:$0xff] }
 0x209   :  { %1716 = vmatprep.subr.mxu0 %v791_v22  ;;  %1673 = vmatpush3.msra.mxu1 %v743_v23  ;;  %v654_v22 = vld [vmem:[#allocation3 + $0xd] sm:$0xff]  ;;  %v811_v23 = vld [vmem:[%s3075_s9 + $0x470] sm:$0xff] }
 0x20a   :  { %1717 = vmatpush3.msra.mxu0 %v775_v26  ;;  %1674 = vmatprep.subr.mxu1 %v758_v27  ;;  %v662_v24 = vld [vmem:[#allocation3 + $0xf] sm:$0xff]  ;;  %v655_v42 = vld [vmem:[#allocation3 + $0x1d] sm:$0xff] }
 0x20b   :  { %1718 = vmatprep.subr.mxu0 %v790_v28  ;;  %900 = vmatmul.mubr.f32.gmra.mxu1 %v2818_v3  ;;  %v658_v26 = vld [vmem:[#allocation3 + $0xe] sm:$0xff]  ;;  %v659_v28 = vld [vmem:[#allocation3 + $0x1e] sm:$0xff] }
 0x20c   :  { %985 = vmatmul.mubr.f32.gmra.mxu0 %v644_v31  ;;  %1675 = vmatpush3.msra.mxu1 %v742_v29  ;;  %v809_v27 = vld [vmem:[%s3075_s9 + $0x460] sm:$0xff]  ;;  %v808_v29 = vld [vmem:[%s3075_s9 + $0x458] sm:$0xff] }
 0x20d   :  { %1719 = vmatpush3.msra.mxu0 %v774_v30  ;;  %1676 = vmatprep.subr.mxu1 %v757_v32  ;;  %v664_v30 = vld [vmem:[#allocation3 + $0x27] sm:$0xff]  ;;  %v806_v32 = vld [vmem:[%s3075_s9 + $0x448] sm:$0xff] }
 0x20e   :  { %1054 = vmatprep.mubr.f32.mxu1 %v653_v34  ;;  %1720 = vmatprep.subr.mxu0 %v789_v33  ;;  %v660_v31 = vld [vmem:[#allocation3 + $0x26] sm:$0xff]  ;;  %v805_v33 = vld [vmem:[%s3075_s9 + $0x440] sm:$0xff] }
 0x20f   :  { %1139 = vmatprep.mubr.f32.mxu0 %v661_v38  ;;  %1677 = vmatpush3.msra.mxu1 %v741_v35  ;;  %v799_v34 = vld [vmem:[%s3075_s9 + $0x410] sm:$0xff]  ;;  %v798_v35 = vld [vmem:[%s3075_s9 + $0x408] sm:$0xff]  ;;  %v666_v38 = vld [vmem:[#allocation3 + $0x10] sm:$0xff] }
 0x210   :  { %1721 = vmatpush3.msra.mxu0 %v773_v36  ;;  %1678 = vmatprep.subr.mxu1 %v756_v39  ;;  %v797_v36 = vld [vmem:[%s3075_s9 + $0x400] sm:$0xff]  ;;  %v668_v39 = vld [vmem:[#allocation3 + $0x28] sm:$0xff] }
 0x211   :  { %1722 = vmatprep.subr.mxu0 %v788_v40  ;;  %1679 = vmatpush3.msra.mxu1 %v740_v43  ;;  %v1264_v40 = vld [vmem:[%s3078_s11 + $0x78] sm:$0xff]  ;;  %v1263_v43 = vld [vmem:[%s3078_s11 + $0x70] sm:$0xff] }
 0x212   :  { %1723 = vmatpush3.msra.mxu0 %v772_v48  ;;  %1680 = vmatprep.subr.mxu1 %v755_v52  ;;  %v1261_v48 = vld [vmem:[%s3078_s11 + $0x60] sm:$0xff]  ;;  %v1260_v52 = vld [vmem:[%s3078_s11 + $0x58] sm:$0xff] }
 0x213   :  { %1724 = vmatprep.subr.mxu0 %v787_v53  ;;  %1681 = vmatpush3.msra.mxu1 %v739_v54  ;;  %v1259_v53 = vld [vmem:[%s3078_s11 + $0x50] sm:$0xff]  ;;  %v1258_v54 = vld [vmem:[%s3078_s11 + $0x48] sm:$0xff] }
 0x214   :  { %1725 = vmatpush3.msra.mxu0 %v771_v55  ;;  %1682 = vmatprep.subr.mxu1 %v754_v56  ;;  %v1257_v55 = vld [vmem:[%s3078_s11 + $0x40] sm:$0xff]  ;;  %v1256_v56 = vld [vmem:[%s3078_s11 + $0x38] sm:$0xff] }
 0x215   :  { %1726 = vmatprep.subr.mxu0 %v786_v57  ;;  %1683 = vmatpush3.msra.mxu1 %v738_v60  ;;  %v1255_v57 = vld [vmem:[%s3078_s11 + $0x30] sm:$0xff]  ;;  %v1254_v60 = vld [vmem:[%s3078_s11 + $0x28] sm:$0xff] }
 0x216   :  { %1727 = vmatpush3.msra.mxu0 %v770_v61  ;;  %1684 = vmatprep.subr.mxu1 %v753_v62  ;;  %v1253_v61 = vld [vmem:[%s3078_s11 + $0x20] sm:$0xff]  ;;  %v1252_v62 = vld [vmem:[%s3078_s11 + $0x18] sm:$0xff] }
 0x217   :  { %1728 = vmatprep.subr.mxu0 %v785_v63  ;;  %1685 = vmatpush3.msra.mxu1 %v737_v0  ;;  %v1251_v63 = vld [vmem:[%s3078_s11 + $0x10] sm:$0xff]  ;;  %v1250_v0 = vld [vmem:[%s3078_s11 + $0x8] sm:$0xff] }
 0x218   :  { %1729 = vmatpush3.msra.mxu0 %v769_v1  ;;  %1686 = vmatprep.subr.mxu1 %v752_v2  ;;  %v1249_v1 = vld [vmem:[%s3078_s11] sm:$0xff] }
 0x219   :  { %1730 = vmatprep.subr.mxu0 %v784_v4  ;;  %1687 = vmatpush3.msra.mxu1 %v736_v5 }
 0x21a   :  { %1731 = vmatpush3.msra.mxu0 %v768_v6  ;;  %1688 = vmatprep.subr.mxu1 %v751_v8 }
 0x21b   :  { %1732 = vmatprep.subr.mxu0 %v783_v9  ;;  %1689 = vmatpush3.msra.mxu1 %v735_v10 }
 0x21c   :  { %1733 = vmatpush3.msra.mxu0 %v767_v11  ;;  %1690 = vmatprep.subr.mxu1 %v750_v12 }
 0x21d   :  { %1734 = vmatprep.subr.mxu0 %v782_v13  ;;  %1691 = vmatpush3.msra.mxu1 %v734_v14 }
 0x21e   :  { %1735 = vmatpush3.msra.mxu0 %v766_v15  ;;  %1692 = vmatprep.subr.mxu1 %v749_v16 }
 0x21f   :  { %1736 = vmatprep.subr.mxu0 %v781_v17  ;;  %1693 = vmatpush3.msra.mxu1 %v733_v18 }
 0x220   :  { %1737 = vmatpush3.msra.mxu0 %v765_v19  ;;  %1055 = vmatmul.mubr.f32.vlgmr.msra.gmra.mxu1 %v621_v44  ;;  %v663_v44 = vld [vmem:[#allocation3 + $0x1f] sm:$0xff] }
 0x221   :  { %1140 = vmatmul.mubr.f32.vlgmr.msra.gmra.mxu0 %v657_v21  ;;  %1936 = vmatprep.subr.mxu1 %v812_v20 }
 0x222   :  { %1059 = vmatprep.mubr.f32.mxu1 %v654_v22  ;;  %1144 = vmatprep.mubr.f32.mxu0 %v662_v24 }
 0x223   :  { %1937 = vmatpush3.msra.mxu1 %v812_v20  ;;  %1974 = vmatprep.subr.mxu0 %v1264_v40 }
 0x224   :  { %1938 = vmatprep.subr.mxu1 %v811_v23  ;;  %1060 = vmatmul.mubr.f32.gmra.mxu1 %v622_v41  ;;  %v656_v41 = vld [vmem:[#allocation3 + $0x25] sm:$0xff] }
 0x225   :  { %1939 = vmatpush3.msra.mxu1 %v811_v23  ;;  %1145 = vmatmul.mubr.f32.gmra.mxu0 %v658_v26 }
 0x226   :  { %1940 = vmatprep.subr.mxu1 %v810_v25  ;;  %1064 = vmatprep.mubr.f32.mxu1 %v655_v42 }
 0x227   :  { %1149 = vmatprep.mubr.f32.mxu0 %v663_v44  ;;  %1941 = vmatpush3.msra.mxu1 %v810_v25 }
 0x228   :  { %1942 = vmatprep.subr.mxu1 %v809_v27  ;;  %1065 = vmatmul.mubr.f32.gmra.mxu1 %v623_v51  ;;  %v803_v51 = vld [vmem:[%s3075_s9 + $0x430] sm:$0xff] }
 0x229   :  { %1150 = vmatmul.mubr.f32.gmra.mxu0 %v659_v28  ;;  %1943 = vmatpush3.msra.mxu1 %v809_v27 }
 0x22a   :  { %1154 = vmatprep.mubr.f32.mxu0 %v664_v30  ;;  %1944 = vmatprep.subr.mxu1 %v808_v29 }
 0x22b   :  { %1069 = vmatprep.mubr.f32.mxu1 %v656_v41  ;;  %1945 = vmatpush3.msra.mxu1 %v808_v29 }
 0x22c   :  { %1946 = vmatprep.subr.mxu1 %v807_v37  ;;  %1070 = vmatmul.mubr.f32.gmra.mxu1 %v624_v49  ;;  %v801_v49 = vld [vmem:[%s3075_s9 + $0x420] sm:$0xff] }
 0x22d   :  { %1155 = vmatmul.mubr.f32.gmra.mxu0 %v660_v31  ;;  %1947 = vmatpush3.msra.mxu1 %v807_v37  ;;  %v1454_v31 = vld [vmem:[%s3079_s10] ss:$0 sm:$0xff] }
 0x22e   :  { %1948 = vmatprep.subr.mxu1 %v806_v32  ;;  %1968 = vmatprep.mubr.f32.mxu1 %v2767_v7  ;;  %v800_v7 = vld [vmem:[%s3075_s9 + $0x418] sm:$0xff] }
 0x22f   :  { %1949 = vmatpush3.msra.mxu1 %v806_v32  ;;  %1975 = vmatpush3.msra.mxu0 %v1264_v40 }
 0x230   :  { %1950 = vmatprep.subr.mxu1 %v805_v33  ;;  %1976 = vmatprep.subr.mxu0 %v1263_v43 }
 0x231   :  { %1951 = vmatpush3.msra.mxu1 %v805_v33  ;;  %1977 = vmatpush3.msra.mxu0 %v1263_v43 }
 0x232   :  { %1952 = vmatprep.subr.mxu1 %v804_v50 }
 0x233   :  { %1953 = vmatpush3.msra.mxu1 %v804_v50 }
 0x234   :  { %1954 = vmatprep.subr.mxu1 %v803_v51 }
 0x235   :  { %1955 = vmatpush3.msra.mxu1 %v803_v51 }
 0x236   :  { %1956 = vmatprep.subr.mxu1 %v802_v45 }
 0x237   :  { %1957 = vmatpush3.msra.mxu1 %v802_v45 }
 0x238   :  { %1958 = vmatprep.subr.mxu1 %v801_v49 }
 0x239   :  { %1959 = vmatpush3.msra.mxu1 %v801_v49 }
 0x23a   :  { %1960 = vmatprep.subr.mxu1 %v800_v7 }
 0x23b   :  { %1961 = vmatpush3.msra.mxu1 %v800_v7 }
 0x23c   :  { %1962 = vmatprep.subr.mxu1 %v799_v34 }
 0x23d   :  { %1963 = vmatpush3.msra.mxu1 %v799_v34 }
 0x23e   :  { %1964 = vmatprep.subr.mxu1 %v798_v35 }
 0x23f   :  { %1965 = vmatpush3.msra.mxu1 %v798_v35 }
 0x240   :  { %1966 = vmatprep.subr.mxu1 %v797_v36 }
 0x241   :  { %1967 = vmatpush3.msra.mxu1 %v797_v36 }
 0x242   :  { %1969 = vmatmul.mubr.f32.vlgmr.msra.gmra.mxu1 %v666_v38  ;;  %2012 = vmatprep.subr.mxu1 %v1264_v40 }
 0x243   :  { %1971 = vmatprep.mubr.f32.mxu1 %v2818_v3  ;;  %2028 = vmatpush3.msra.mxu1 %v1264_v40  ;;  %v1262_v3 = vld [vmem:[%s3078_s11 + $0x68] sm:$0xff] }
 0x244   :  { %2013 = vmatprep.subr.mxu1 %v1263_v43  ;;  %1978 = vmatprep.subr.mxu0 %v1262_v3 }
 0x245   :  { %2029 = vmatpush3.msra.mxu1 %v1263_v43  ;;  %1979 = vmatpush3.msra.mxu0 %v1262_v3 }
 0x246   :  { %1972 = vmatmul.mubr.f32.gmra.mxu1 %v668_v39  ;;  %2014 = vmatprep.subr.mxu1 %v1262_v3 }
 0x247   :  { %2030 = vmatpush3.msra.mxu1 %v1262_v3  ;;  %1980 = vmatprep.subr.mxu0 %v1261_v48 }
 0x248   :  { %2015 = vmatprep.subr.mxu1 %v1261_v48  ;;  %1981 = vmatpush3.msra.mxu0 %v1261_v48 }
 0x249   :  { %2031 = vmatpush3.msra.mxu1 %v1261_v48  ;;  %1982 = vmatprep.subr.mxu0 %v1260_v52 }
 0x24a   :  { %2016 = vmatprep.subr.mxu1 %v1260_v52  ;;  %1983 = vmatpush3.msra.mxu0 %v1260_v52 }
 0x24b   :  { %2032 = vmatpush3.msra.mxu1 %v1260_v52  ;;  %1984 = vmatprep.subr.mxu0 %v1259_v53 }
 0x24c   :  { %2017 = vmatprep.subr.mxu1 %v1259_v53  ;;  %1985 = vmatpush3.msra.mxu0 %v1259_v53 }
 0x24d   :  { %2033 = vmatpush3.msra.mxu1 %v1259_v53  ;;  %1986 = vmatprep.subr.mxu0 %v1258_v54 }
 0x24e   :  { %2018 = vmatprep.subr.mxu1 %v1258_v54  ;;  %1987 = vmatpush3.msra.mxu0 %v1258_v54 }
 0x24f   :  { %2034 = vmatpush3.msra.mxu1 %v1258_v54  ;;  %1988 = vmatprep.subr.mxu0 %v1257_v55 }
 0x250   :  { %2019 = vmatprep.subr.mxu1 %v1257_v55  ;;  %1989 = vmatpush3.msra.mxu0 %v1257_v55 }
 0x251   :  { %2035 = vmatpush3.msra.mxu1 %v1257_v55  ;;  %1990 = vmatprep.subr.mxu0 %v1256_v56 }
 0x252   :  { %2020 = vmatprep.subr.mxu1 %v1256_v56  ;;  %1991 = vmatpush3.msra.mxu0 %v1256_v56 }
 0x253   :  { %2036 = vmatpush3.msra.mxu1 %v1256_v56  ;;  %1992 = vmatprep.subr.mxu0 %v1255_v57 }
 0x254   :  { %2021 = vmatprep.subr.mxu1 %v1255_v57  ;;  %1993 = vmatpush3.msra.mxu0 %v1255_v57 }
 0x255   :  { %2037 = vmatpush3.msra.mxu1 %v1255_v57  ;;  %1994 = vmatprep.subr.mxu0 %v1254_v60 }
 0x256   :  { %2022 = vmatprep.subr.mxu1 %v1254_v60  ;;  %1995 = vmatpush3.msra.mxu0 %v1254_v60 }
 0x257   :  { %2038 = vmatpush3.msra.mxu1 %v1254_v60  ;;  %1996 = vmatprep.subr.mxu0 %v1253_v61 }
 0x258   :  { %2023 = vmatprep.subr.mxu1 %v1253_v61  ;;  %1997 = vmatpush3.msra.mxu0 %v1253_v61 }
 0x259   :  { %2039 = vmatpush3.msra.mxu1 %v1253_v61  ;;  %1998 = vmatprep.subr.mxu0 %v1252_v62 }
 0x25a   :  { %2024 = vmatprep.subr.mxu1 %v1252_v62  ;;  %1999 = vmatpush3.msra.mxu0 %v1252_v62 }
 0x25b   :  { %2040 = vmatpush3.msra.mxu1 %v1252_v62  ;;  %2000 = vmatprep.subr.mxu0 %v1251_v63 }
 0x25c   :  { %2025 = vmatprep.subr.mxu1 %v1251_v63  ;;  %2001 = vmatpush3.msra.mxu0 %v1251_v63 }
 0x25d   :  { %2041 = vmatpush3.msra.mxu1 %v1251_v63  ;;  %2002 = vmatprep.subr.mxu0 %v1250_v0 }
 0x25e   :  { %2026 = vmatprep.subr.mxu1 %v1250_v0  ;;  %2003 = vmatpush3.msra.mxu0 %v1250_v0 }
 0x25f   :  { %2042 = vmatpush3.msra.mxu1 %v1250_v0  ;;  %2004 = vmatprep.subr.mxu0 %v1249_v1 }
 0x260   :  { %2027 = vmatprep.subr.mxu1 %v1249_v1  ;;  %2005 = vmatpush3.msra.mxu0 %v1249_v1 }
 0x261   :  { %2043 = vmatpush3.msra.mxu1 %v1249_v1 }
 0x28d   :  { %v3035_v2 = vpop.f32.mrf.mxu1 }
 0x28f   :  { %v1897_v4 = vpop.f32.mrf.mxu1 }
 0x2b9   :  { %v1606_v5 = vpop.f32.mrf.mxu1 }
 0x2ba   :  { %v1650_v8 = vpop.f32.mrf.mxu0 }
 0x2bb   :  { %v1607_v6 = vpop.f32.mrf.mxu1 }
 0x2bc   :  { %v1651_v10 = vpop.f32.mrf.mxu0  ;;  %v1608_v37 = vadd.f32 %v1607_v6, %v1606_v5 }
 0x2bd   :  { %v1652_v35 = vadd.f32 %v1651_v10, %v1650_v8 }
 0x2be   :  { %v887_v51 = vadd.f32 %v1608_v37, %v1454_v31 }
 0x2bf   :  { %v1609_v9 = vpop.f32.mrf.mxu1 }
 0x2c0   :  { %v1653_v12 = vpop.f32.mrf.mxu0  ;;  %v972_v43 = vadd.f32 %v1652_v35, %v887_v51 }
 0x2c1   :  { %v1610_v11 = vpop.f32.mrf.mxu1 }
 0x2c2   :  { %v1654_v14 = vpop.f32.mrf.mxu0  ;;  %v1611_v30 = vadd.f32 %v1610_v11, %v1609_v9 }
 0x2c3   :  { %v1655_v7 = vadd.f32 %v1654_v14, %v1653_v12 }
 0x2c4   :  { %v892_v33 = vadd.f32 %v1611_v30, %v1454_v31 }
 0x2c5   :  { %v1612_v13 = vpop.f32.mrf.mxu1 }
 0x2c6   :  { %v1656_v16 = vpop.f32.mrf.mxu0  ;;  %v977_v39 = vadd.f32 %v1655_v7, %v892_v33 }
 0x2c7   :  { %v1613_v15 = vpop.f32.mrf.mxu1 }
 0x2c8   :  { %v1657_v18 = vpop.f32.mrf.mxu0  ;;  %v1614_v45 = vadd.f32 %v1613_v15, %v1612_v13 }
 0x2c9   :  { %v1658_v55 = vadd.f32 %v1657_v18, %v1656_v16 }
 0x2ca   :  { %v897_v3 = vadd.f32 %v1614_v45, %v1454_v31 }
 0x2cb   :  { %v1615_v17 = vpop.f32.mrf.mxu1 }
 0x2cc   :  { %v1659_v20 = vpop.f32.mrf.mxu0  ;;  %v982_v62 = vadd.f32 %v1658_v55, %v897_v3 }
 0x2cd   :  { %v1616_v19 = vpop.f32.mrf.mxu1 }
 0x2ce   :  { %v1660_v22 = vpop.f32.mrf.mxu0  ;;  %v1617_v50 = vadd.f32 %v1616_v19, %v1615_v17 }
 0x2cf   :  { %v1661_v52 = vadd.f32 %v1660_v22, %v1659_v20 }
 0x2d0   :  { %v902_v40 = vadd.f32 %v1617_v50, %v1454_v31 }
 0x2d2   :  { %v987_v60 = vadd.f32 %v1661_v52, %v902_v40 }
 0x2e0   :  { %v1694_v21 = vpop.f32.mrf.mxu1 }
 0x2e1   :  { %v1738_v24 = vpop.f32.mrf.mxu0 }
 0x2e2   :  { %v1695_v23 = vpop.f32.mrf.mxu1 }
 0x2e3   :  { %v1739_v26 = vpop.f32.mrf.mxu0  ;;  %v1696_v36 = vadd.f32 %v1695_v23, %v1694_v21 }
 0x2e4   :  { %v1697_v25 = vpop.f32.mrf.mxu1  ;;  %v1740_v63 = vadd.f32 %v1739_v26, %v1738_v24  ;;  %v1452_v24 = vld [vmem:[%s3080_s6] ss:$0 sm:$0xff] }
 0x2e5   :  { %v1741_v44 = vpop.f32.mrf.mxu0  ;;  %v1057_v56 = vadd.f32 %v1696_v36, %v972_v43 }
 0x2e6   :  { %v1698_v42 = vpop.f32.mrf.mxu1 }
 0x2e7   :  { %v1742_v28 = vpop.f32.mrf.mxu0  ;;  %v1699_v34 = vadd.f32 %v1698_v42, %v1697_v25  ;;  %v1142_v8 = vadd.f32 %v1740_v63, %v1057_v56  ;;  %v500_v25 = vadd.f32 %v1452_v24, %v3035_v2  ;;  %v2069_v56 = vmov 1966171168  }
 0x2e8   :  { %v1700_v27 = vpop.f32.mrf.mxu1  ;;  %v1743_v61 = vadd.f32 %v1742_v28, %v1741_v44  ;;  %v1455_v28 = vld [vmem:[%s3081_s12] ss:$0 sm:$0xff] }
 0x2e9   :  { %v1744_v41 = vpop.f32.mrf.mxu0  ;;  %v1062_v53 = vadd.f32 %v1699_v34, %v977_v39  ;;  %v503_v26 = vmax.f32 %v500_v25, 0.0 }
 0x2ea   :  { %v1701_v29 = vpop.f32.mrf.mxu1 }
 0x2eb   :  { %v1745_v49 = vpop.f32.mrf.mxu0  ;;  %v1702_v57 = vadd.f32 %v1701_v29, %v1700_v27  ;;  %v1147_v4 = vadd.f32 %v1743_v61, %v1062_v53  ;;  %v504_v42 = vand.u32 2147483647, %v503_v26  ;;  %vm510_vm2 = vcmp.ge.f32.partialorder %v503_v26, 0.0 }
 0x2ec   :  { %v1703_v32 = vpop.f32.mrf.mxu1  ;;  %v1746_v12 = vadd.f32 %v1745_v49, %v1744_v41 }
 0x2ed   :  { %v1747_v48 = vpop.f32.mrf.mxu0  ;;  %v1067_v6 = vadd.f32 %v1702_v57, %v982_v62  ;;  %v505_v44 = vsub.f32 0.0, %v504_v42  ;;  %v1399_v57 = vunpack.c.l.s4 %v2069_v56 }
 0x2ee   :  { %v1704_v38 = vpop.f32.mrf.mxu1 }
 0x2ef   :  { %v1705_v54 = vadd.f32 %v1704_v38, %v1703_v32  ;;  %v1748_v0 = vpop.f32.mrf.mxu0  ;;  %v1152_v17 = vadd.f32 %v1746_v12, %v1067_v6  ;;  %v506_v27 = vmul.f32 1.442695, %v505_v44 }
 0x2f0   :  { %v1749_v9 = vadd.f32 %v1748_v0, %v1747_v48 }
 0x2f1   :  { %v1072_v1 = vadd.f32 %v1705_v54, %v987_v60  ;;  %2047 = vpow2.f32 %v506_v27  ;;  %v1401_v60 = vlaneseq }
 0x2f3   :  { %v1157_v14 = vadd.f32 %v1749_v9, %v1072_v1  ;;  %v1400_v1 = vunpack.c.0.s8 %v1399_v57 }
 0x2fe   :  { %v2048_v41 = vpop.eup %2047 }
 0x2ff   :  { %v508_v2 = vadd.f32 1.0, %v2048_v41 }
 0x301   :  { %2049 = vrcp.f32 %v508_v2 }
 0x302   :  { %v1970_v5 = vpop.f32.mrf.mxu1 }
 0x303   :  { %v1232_v10 = vadd.f32 %v1970_v5, %v1147_v4  ;;  %v1402_v4 = vshrl.u32 %v1401_v60, 7 }
 0x304   :  { %v1226_v11 = vpop.f32.mrf.mxu1 }
 0x305   :  { %v1227_v13 = vadd.f32 %v1226_v11, %v1142_v8  ;;  %v1246_v18 = vmax.f32 %v1232_v10, 0.0  ;;  %v1403_v10 = vsub.s32 %v1400_v1, %v1402_v4 }
 0x306   :  { %v1973_v15 = vpop.f32.mrf.mxu1 }
 0x307   :  { %v1245_v16 = vmax.f32 %v1227_v13, 0.0  ;;  %v1242_v19 = vadd.f32 %v1973_v15, %v1157_v14 }
 0x308   :  { %v1236_v20 = vpop.f32.mrf.mxu1 }
 0x309   :  { %v1237_v21 = vadd.f32 %v1236_v20, %v1152_v17  ;;  %2006 = vmatprep.mubr.f32.mxu0 %v1245_v16  ;;  %v1248_v23 = vmax.f32 %v1242_v19, 0.0  ;;  %v1422_v17 = vsub.s32 0, %v1402_v4 }
 0x30a   :  { %2007 = vmatmul.mubr.f32.vlgmr.msra.gmra.mxu0 %v1246_v18 }
 0x30b   :  { %v1247_v22 = vmax.f32 %v1237_v21, 0.0 }
 0x30d   :  { %2009 = vmatprep.mubr.f32.mxu1 %v1247_v22 }
 0x30e   :  { %2010 = vmatmul.mubr.f32.vlgmr.msra.gmra.mxu1 %v1248_v23  ;;  %v2050_v61 = vpop.eup %2049 }
 0x30f   :  { %v511_v5 = vmul.f32 %v2050_v61, %v2048_v41 }
 0x311   :  { %v512_v12 = vsel %vm510_vm2, %v2050_v61, %v511_v5 }
 0x312   :  { %v1404_v14 = vrot.slane %v512_v12, %v1403_v10 }
 0x314   :  { %v1405_v15 = vcombine.high %v1404_v14, %v1404_v14  ;;  %v1412_v16 = vrot.slane %v1404_v14, %v1403_v10 }
 0x316   :  { %v1423_v21 = vrot.slane %v1412_v16, %v1422_v17  ;;  %v1419_v22 = vrot.slane %v1405_v15, %v1403_v10 }
 0x3ca   :  { %v2008_v29 = vpop.f32.mrf.mxu0 }
 0x3cb   :  { %v1344_v30 = vadd.f32 %v2008_v29, %v1455_v28  ;;  %v1427_v29 = vrot.slane %v1419_v22, %v1422_v17 }
 0x3cc   :  { %v1338_v37 = vpop.f32.mrf.mxu0 }
 0x3cd   :  { %v1358_v31 = vmax.f32 %v1344_v30, 0.0  ;;  %v1339_v32 = vadd.f32 %v1455_v28, %v1338_v37 }
 0x3ce   :  { %v2011_v33 = vpop.f32.mrf.mxu1 }
 0x3cf   :  { %v1362_v50 = vand.u32 2147483647, %v1358_v31  ;;  %v1357_v51 = vmax.f32 %v1339_v32, 0.0  ;;  %v3047_v45 = vadd.f32 %v2011_v33, %v1455_v28  ;;  %vm1386_vm3 = vcmp.ge.f32.partialorder %v1358_v31, 0.0 }
 0x3d0   :  { %v1348_v49 = vpop.f32.mrf.mxu1 }
 0x3d1   :  { %v1366_v7 = vsub.f32 0.0, %v1362_v50  ;;  %v1361_v34 = vand.u32 2147483647, %v1357_v51  ;;  %v1360_v35 = vmax.f32 %v3047_v45, 0.0  ;;  %v3050_v36 = vadd.f32 %v1455_v28, %v1348_v49 }
 0x3d2   :  { %vm1385_vm4 = vcmp.ge.f32.partialorder %v1357_v51, 0.0 }
 0x3d3   :  { %v1371_v38 = vmul.f32 1.442695, %v1366_v7  ;;  %v1365_v39 = vsub.f32 0.0, %v1361_v34  ;;  %v1364_v40 = vand.u32 2147483647, %v1360_v35  ;;  %v1359_v43 = vmax.f32 %v3050_v36, 0.0 }
 0x3d4   :  { %vm1388_vm5 = vcmp.ge.f32.partialorder %v1360_v35, 0.0 }
 0x3d5   :  { %2051 = vpow2.f32 %v1371_v38  ;;  %v1369_v3 = vmul.f32 1.442695, %v1365_v39  ;;  %v1368_v48 = vsub.f32 0.0, %v1364_v40  ;;  %v1363_v52 = vand.u32 2147483647, %v1359_v43 }
 0x3d6   :  { %vm1387_vm6 = vcmp.ge.f32.partialorder %v1359_v43, 0.0 }
 0x3d7   :  { %2053 = vpow2.f32 %v1369_v3  ;;  %v1375_v53 = vmul.f32 1.442695, %v1368_v48  ;;  %v1367_v54 = vsub.f32 0.0, %v1363_v52 }
 0x3d9   :  { %2055 = vpow2.f32 %v1375_v53  ;;  %v1373_v55 = vmul.f32 1.442695, %v1367_v54 }
 0x3db   :  { %2057 = vpow2.f32 %v1373_v55 }
 0x3e2   :  { %v2052_v62 = vpop.eup %2051 }
 0x3e3   :  { %v1378_v63 = vadd.f32 1.0, %v2052_v62 }
 0x3e4   :  { %v2054_v0 = vpop.eup %2053 }
 0x3e5   :  { %2059 = vrcp.f32 %v1378_v63  ;;  %v1377_v6 = vadd.f32 1.0, %v2054_v0 }
 0x3e6   :  { %v2056_v8 = vpop.eup %2055 }
 0x3e7   :  { %2061 = vrcp.f32 %v1377_v6  ;;  %v1380_v9 = vadd.f32 1.0, %v2056_v8 }
 0x3e8   :  { %v2058_v11 = vpop.eup %2057 }
 0x3e9   :  { %2063 = vrcp.f32 %v1380_v9  ;;  %v1379_v13 = vadd.f32 1.0, %v2058_v11 }
 0x3eb   :  { %2065 = vrcp.f32 %v1379_v13 }
 0x3f2   :  { %v2060_v18 = vpop.eup %2059 }
 0x3f3   :  { %v1390_v19 = vmul.f32 %v2060_v18, %v2052_v62 }
 0x3f4   :  { %v2062_v20 = vpop.eup %2061 }
 0x3f5   :  { %v1394_v23 = vsel %vm1386_vm3, %v2060_v18, %v1390_v19  ;;  %v1389_v24 = vmul.f32 %v2062_v20, %v2054_v0 }
 0x3f6   :  { %v2064_v25 = vpop.eup %2063  ;;  %v1431_v26 = vmul.f32 %v1423_v21, %v1394_v23 }
 0x3f7   :  { %v1393_v42 = vsel %vm1385_vm4, %v2062_v20, %v1389_v24  ;;  %v1392_v44 = vmul.f32 %v2064_v25, %v2056_v8 }
 0x3f8   :  { %v1435_v27 = vadd.f32 1.0, %v1431_v26  ;;  %v1430_v28 = vmul.f32 %v1423_v21, %v1393_v42  ;;  %v2066_v30 = vpop.eup %2065 }
 0x3f9   :  { %v1396_v37 = vsel %vm1388_vm5, %v2064_v25, %v1392_v44  ;;  %v1391_v31 = vmul.f32 %v2066_v30, %v2058_v11 }
 0x3fa   :  { %v1439_v41 = vmul.f32 %v1435_v27, %v2440_v46  ;;  %v1434_v32 = vadd.f32 1.0, %v1430_v28  ;;  %v1433_v33 = vmul.f32 %v1427_v29, %v1396_v37 }
 0x3fb   :  { %v1395_v45 = vsel %vm1387_vm6, %v2066_v30, %v1391_v31 }
 0x3fc   :  { %1443 = vst [vmem:[%s3082_s13 + $0x8] sm:$0xff] %v1439_v41  ;;  %v1438_v50 = vmul.f32 %v1434_v32, %v2442_v47  ;;  %v1437_v51 = vadd.f32 1.0, %v1433_v33  ;;  %v1432_v2 = vmul.f32 %v1427_v29, %v1395_v45 }
 0x3fe   :  { %1442 = vst [vmem:[%s3082_s13] sm:$0xff] %v1438_v50  ;;  %v1441_v49 = vmul.f32 %v1437_v51, %v2446_v58  ;;  %v1436_v46 = vadd.f32 1.0, %v1432_v2 }
 0x400   :  { %1445 = vst [vmem:[%s3082_s13 + $0x18] sm:$0xff] %v1441_v49  ;;  %v1440_v7 = vmul.f32 %v1436_v46, %v2448_v59 }
 0x402   :  { %1444 = vst [vmem:[%s3082_s13 + $0x10] sm:$0xff] %v1440_v7 }

</bundles_post_ra>
